<compile_context>
chip_gen: v5e
topology: v5e:2x2
jax: 0.10.0
libtpu: 0.0.40
codegen_flags: <defaults>
</compile_context>

<pallas_src>
import functools
import math
from dataclasses import dataclass

import jax
import jax.numpy as jnp
from jax.experimental import pallas as pl
from jax.experimental.pallas import tpu as pltpu


# ----------------------------- config ---------------------------------------
@dataclass
class GPTConfig:
    vocab_size: int = 64
    block_size: int = 16
    n_layer: int = 2
    n_head: int = 2
    n_embd: int = 32
    num_channels: int = 4
    channel_dim: int = 32


# ------------------------- Pallas kernel ------------------------------------
def _layernorm(x, w, b, eps=1e-5):
    mu = jnp.mean(x, axis=-1, keepdims=True)
    xc = x - mu
    var = jnp.mean(xc * xc, axis=-1, keepdims=True)
    return xc * jax.lax.rsqrt(var + eps) * w + b


def gpt_fused_kernel(x_ref, ln_ref, wqkv_ref, bqkv_ref, wo_ref, bo_ref,
                     wfc_ref, bfc_ref, wpr_ref, bpr_ref, lnf_ref, wte_t_ref,
                     logits_ref, *, n_head, n_layer):
    """Full GPT trunk: all blocks + ln_f + tied lm_head.

    x_ref:      (B, T, C)  f32  (embeddings already summed)
    ln_ref:     (L, 4, C)  f32  rows = [ln1_w, ln1_b, ln2_w, ln2_b]
    wqkv_ref:   (L, C, 3C) bf16     bqkv_ref: (L, 1, 3C) f32
    wo_ref:     (L, C, C)  bf16     bo_ref:   (L, 1, C)  f32
    wfc_ref:    (L, C, 4C) bf16     bfc_ref:  (L, 1, 4C) f32
    wpr_ref:    (L, 4C, C) bf16     bpr_ref:  (L, 1, C)  f32
    lnf_ref:    (2, C)     f32  rows = [lnf_w, lnf_b]
    wte_t_ref:  (C, Vpad)  bf16  (tied lm_head weight, lane-padded to 128)
    logits_ref: (B*T, Vpad) f32
    """
    x = x_ref[...].astype(jnp.float32)                     # (B, T, C)
    B, T, C = x.shape
    hd = C // n_head
    inv_sqrt_hd = 1.0 / math.sqrt(hd)
    BT = B * T
    x2 = x.reshape(BT, C)                                  # (BT, C) residual stream

    row = jax.lax.broadcasted_iota(jnp.int32, (T, T), 0)
    col = jax.lax.broadcasted_iota(jnp.int32, (T, T), 1)
    causal = (col <= row)[None, :, :]                      # (1, T, T)

    for l in range(n_layer):                               # static unroll
        ln_l = ln_ref[l]                                   # (4, C)

        # ---- ln_1 + c_attn ----
        h = _layernorm(x2, ln_l[0:1, :], ln_l[1:2, :])
        qkv = jnp.dot(h.astype(jnp.bfloat16), wqkv_ref[l],
                      preferred_element_type=jnp.float32) + bqkv_ref[l]   # (BT, 3C)

        # ---- causal self-attention (batched over B per head; head output is
        #      folded through its slice of the out-projection) ----
        wo = wo_ref[l]                                     # (C, C) bf16
        attn_acc = jnp.zeros((BT, C), jnp.float32)
        for hh in range(n_head):
            qh = qkv[:, hh * hd:(hh + 1) * hd].reshape(B, T, hd).astype(jnp.bfloat16)
            kh = qkv[:, C + hh * hd:C + (hh + 1) * hd].reshape(B, T, hd).astype(jnp.bfloat16)
            vh = qkv[:, 2 * C + hh * hd:2 * C + (hh + 1) * hd].reshape(B, T, hd).astype(jnp.bfloat16)
            s = jnp.einsum('btd,bsd->bts', qh, kh,
                           preferred_element_type=jnp.float32) * inv_sqrt_hd
            s = jnp.where(causal, s, -1e30)                # finite mask (no NaN risk)
            m = jnp.max(s, axis=-1, keepdims=True)
            p = jnp.exp(s - m)
            p = p / jnp.sum(p, axis=-1, keepdims=True)
            yh = jnp.einsum('bts,bsd->btd', p.astype(jnp.bfloat16), vh,
                            preferred_element_type=jnp.float32)           # (B, T, hd)
            attn_acc = attn_acc + jnp.dot(
                yh.reshape(BT, hd).astype(jnp.bfloat16),
                wo[hh * hd:(hh + 1) * hd, :],
                preferred_element_type=jnp.float32)
        # attn_dropout / resid_dropout are identity in eval mode
        x2 = x2 + attn_acc + bo_ref[l]

        # ---- ln_2 + MLP (GELU tanh) ----
        h2 = _layernorm(x2, ln_l[2:3, :], ln_l[3:4, :])
        f = jnp.dot(h2.astype(jnp.bfloat16), wfc_ref[l],
                    preferred_element_type=jnp.float32) + bfc_ref[l]      # (BT, 4C)
        g = 0.5 * f * (1.0 + jnp.tanh(
            0.7978845608028654 * (f + 0.044715 * f * f * f)))
        x2 = x2 + jnp.dot(g.astype(jnp.bfloat16), wpr_ref[l],
                          preferred_element_type=jnp.float32) + bpr_ref[l]

    # ---- ln_f + tied lm_head (lane-dense padded output) ----
    lnf = lnf_ref[...]
    hf = _layernorm(x2, lnf[0:1, :], lnf[1:2, :])
    logits_ref[...] = jnp.dot(hf.astype(jnp.bfloat16), wte_t_ref[...],
                              preferred_element_type=jnp.float32)


# --------------------------- wrapper -----------------------------------------
def _full_spec(a):
    if a.ndim == 2:
        return pl.BlockSpec(a.shape, lambda i: (0, 0))
    return pl.BlockSpec(a.shape, lambda i: (0, 0, 0))


def run_gpt_core(x, params, cfg: GPTConfig):
    """x: (B, T, C) f32  ->  padded logits (B*T, Vpad) f32."""
    B, T, C = x.shape
    BT = B * T
    Vp = params["wte_t_pad"].shape[1]

    args = (x, params["ln_stack"],
            params["wqkv"], params["bqkv"],
            params["wo"], params["bo"],
            params["wfc"], params["bfc"],
            params["wpr"], params["bpr"],
            params["lnf"], params["wte_t_pad"])

    return pl.pallas_call(
        functools.partial(gpt_fused_kernel,
                          n_head=cfg.n_head, n_layer=cfg.n_layer),
        out_shape=jax.ShapeDtypeStruct((BT, Vp), jnp.float32),
        grid_spec=pltpu.PrefetchScalarGridSpec(
            num_scalar_prefetch=0, grid=(1,),
            in_specs=[_full_spec(a) for a in args],
            out_specs=pl.BlockSpec((BT, Vp), lambda i: (0, 0))),
        compiler_params=pltpu.CompilerParams(
            dimension_semantics=("arbitrary",)),
    )(*args)


# ------------------------ parameter construction ----------------------------
def init_params(cfg: GPTConfig, key):
    std = 0.02
    proj_std = 0.02 * (2 * cfg.n_layer) ** (-0.5)   # NANOGPT_SCALE_INIT
    C, L, V = cfg.n_embd, cfg.n_layer, cfg.vocab_size
    Vp = ((V + 127) // 128) * 128                   # lane-pad the lm_head output
    keys = iter(jax.random.split(key, 4 + 4 * L))

    wte = jax.random.normal(next(keys), (V, C), jnp.float32) * std
    wpe = jax.random.normal(next(keys), (cfg.block_size, C), jnp.float32) * std
    wce = jax.random.normal(next(keys), (cfg.num_channels, cfg.channel_dim),
                            jnp.float32) * std
    w_ch = jax.random.normal(next(keys), (cfg.channel_dim, C), jnp.float32) * std

    wqkv_l, wo_l, wfc_l, wpr_l = [], [], [], []
    for _ in range(L):
        wqkv_l.append(jax.random.normal(next(keys), (C, 3 * C), jnp.float32) * std)
        wo_l.append(jax.random.normal(next(keys), (C, C), jnp.float32) * proj_std)
        wfc_l.append(jax.random.normal(next(keys), (C, 4 * C), jnp.float32) * std)
        wpr_l.append(jax.random.normal(next(keys), (4 * C, C), jnp.float32) * proj_std)

    ln_one = jnp.stack([jnp.ones((C,), jnp.float32), jnp.zeros((C,), jnp.float32),
                        jnp.ones((C,), jnp.float32), jnp.zeros((C,), jnp.float32)])
    ln_stack = jnp.tile(ln_one[None], (L, 1, 1))                     # (L, 4, C)

    # Tied lm_head: transpose + lane-pad ONCE at init (no per-forward wte.T).
    wte_t_pad = jnp.zeros((C, Vp), jnp.float32).at[:, :V].set(wte.T)
    wte_t_pad = wte_t_pad.astype(jnp.bfloat16)

    params = {
        "wte": wte,                                   # f32 (embedding gather)
        "wpe": wpe,
        "wce": wce,
        "w_ch": w_ch,
        "b_ch": jnp.zeros((C,), jnp.float32),
        "channel_scale": jnp.float32(1.0),
        "ln_stack": ln_stack,
        "wqkv": jnp.stack(wqkv_l).astype(jnp.bfloat16),      # (L, C, 3C)
        "bqkv": jnp.zeros((L, 1, 3 * C), jnp.float32),
        "wo": jnp.stack(wo_l).astype(jnp.bfloat16),          # (L, C, C)
        "bo": jnp.zeros((L, 1, C), jnp.float32),
        "wfc": jnp.stack(wfc_l).astype(jnp.bfloat16),        # (L, C, 4C)
        "bfc": jnp.zeros((L, 1, 4 * C), jnp.float32),
        "wpr": jnp.stack(wpr_l).astype(jnp.bfloat16),        # (L, 4C, C)
        "bpr": jnp.zeros((L, 1, C), jnp.float32),
        "lnf": jnp.stack([jnp.ones((C,), jnp.float32),
                          jnp.zeros((C,), jnp.float32)]),    # (2, C)
        "wte_t_pad": wte_t_pad,                              # (C, Vp) bf16
    }
    return params


# ----------------------------- forward ---------------------------------------
def gpt_forward(params, cfg: GPTConfig, idx, channel_idx=None, targets=None):
    B, T = idx.shape
    # Embedding gathers (glue, plain JAX)
    tok_emb = params["wte"][idx]                                  # (B, T, C)
    pos_emb = params["wpe"][jnp.arange(T)]                        # (T, C)
    x = tok_emb + pos_emb[None, :, :]
    if channel_idx is not None:
        cha_small = params["wce"][channel_idx]                    # (B, 1, ch_dim)
        cha_large = cha_small @ params["w_ch"] + params["b_ch"]   # (B, 1, C)
        x = x + params["channel_scale"] * cha_large
    x = x.astype(jnp.float32)

    logits_pad = run_gpt_core(x, params, cfg)                     # (B*T, Vpad)
    logits = logits_pad[:, :cfg.vocab_size].reshape(B, T, cfg.vocab_size)

    loss = None
    if targets is not None:
        logp = jax.nn.log_softmax(logits.reshape(-1, cfg.vocab_size), axis=-1)
        loss = -jnp.mean(jnp.take_along_axis(
            logp, targets.reshape(-1, 1), axis=-1))
    return logits, loss


# ------------------------------- main ----------------------------------------
if __name__ == "__main__":
    cfg = GPTConfig(vocab_size=64, block_size=16, n_layer=2,
                    n_head=2, n_embd=32, num_channels=4, channel_dim=32)
    key = jax.random.PRNGKey(0)
    pkey, ikey, ckey = jax.random.split(key, 3)
    params = init_params(cfg, pkey)

    B, T = 2, 8
    idx = jax.random.randint(ikey, (B, T), 0, cfg.vocab_size, dtype=jnp.int32)
    channel_idx = jax.random.randint(ckey, (B, 1), 0, cfg.num_channels,
                                     dtype=jnp.int32)

    logits, loss = gpt_forward(params, cfg, idx, channel_idx=channel_idx,
                               targets=None)
    jax.block_until_ready(logits)
    assert logits.shape == (B, T, cfg.vocab_size)
    assert logits.dtype == jnp.float32
    print("KERNEL_OK")
</pallas_src>

<mosaic_0001>
module attributes {stable_mosaic.version = 11 : i64} {
  func.func @gpt_fused_kernel(%arg0: i32, %arg1: memref<2x8x32xf32, #tpu.memory_space<vmem>>, %arg2: memref<2x4x32xf32, #tpu.memory_space<vmem>>, %arg3: memref<2x32x96xbf16, #tpu.memory_space<vmem>>, %arg4: memref<2x1x96xf32, #tpu.memory_space<vmem>>, %arg5: memref<2x32x32xbf16, #tpu.memory_space<vmem>>, %arg6: memref<2x1x32xf32, #tpu.memory_space<vmem>>, %arg7: memref<2x32x128xbf16, #tpu.memory_space<vmem>>, %arg8: memref<2x1x128xf32, #tpu.memory_space<vmem>>, %arg9: memref<2x128x32xbf16, #tpu.memory_space<vmem>>, %arg10: memref<2x1x32xf32, #tpu.memory_space<vmem>>, %arg11: memref<2x32xf32, #tpu.memory_space<vmem>>, %arg12: memref<32x128xbf16, #tpu.memory_space<vmem>>, %arg13: memref<16x128xf32, #tpu.memory_space<vmem>>) attributes {dimension_semantics = [#tpu.dimension_semantics<arbitrary>], iteration_bounds = array<i64: 1>, scalar_prefetch = 0 : i64, scratch_operands = 0 : i64, tpu.core_type = #tpu.core_type<tc>, window_params = [{pipeline_mode = #tpu.pipeline_mode<synchronous>, transform_indices = @transform_0, window_bounds = array<i64: 2, 8, 32>}, {pipeline_mode = #tpu.pipeline_mode<synchronous>, transform_indices = @transform_1, window_bounds = array<i64: 2, 4, 32>}, {pipeline_mode = #tpu.pipeline_mode<synchronous>, transform_indices = @transform_2, window_bounds = array<i64: 2, 32, 96>}, {pipeline_mode = #tpu.pipeline_mode<synchronous>, transform_indices = @transform_3, window_bounds = array<i64: 2, 1, 96>}, {pipeline_mode = #tpu.pipeline_mode<synchronous>, transform_indices = @transform_4, window_bounds = array<i64: 2, 32, 32>}, {pipeline_mode = #tpu.pipeline_mode<synchronous>, transform_indices = @transform_5, window_bounds = array<i64: 2, 1, 32>}, {pipeline_mode = #tpu.pipeline_mode<synchronous>, transform_indices = @transform_6, window_bounds = array<i64: 2, 32, 128>}, {pipeline_mode = #tpu.pipeline_mode<synchronous>, transform_indices = @transform_7, window_bounds = array<i64: 2, 1, 128>}, {pipeline_mode = #tpu.pipeline_mode<synchronous>, transform_indices = @transform_8, window_bounds = array<i64: 2, 128, 32>}, {pipeline_mode = #tpu.pipeline_mode<synchronous>, transform_indices = @transform_9, window_bounds = array<i64: 2, 1, 32>}, {pipeline_mode = #tpu.pipeline_mode<synchronous>, transform_indices = @transform_10, window_bounds = array<i64: 2, 32>}, {pipeline_mode = #tpu.pipeline_mode<synchronous>, transform_indices = @transform_11, window_bounds = array<i64: 32, 128>}, {pipeline_mode = #tpu.pipeline_mode<synchronous>, transform_indices = @transform_12, window_bounds = array<i64: 16, 128>}]} {
    %c0 = arith.constant 0 : index
    %c0_0 = arith.constant 0 : index
    %c0_1 = arith.constant 0 : index
    %0 = vector.load %arg1[%c0, %c0_0, %c0_1] : memref<2x8x32xf32, #tpu.memory_space<vmem>>, vector<2x8x32xf32>
    %1 = vector.shape_cast %0 : vector<2x8x32xf32> to vector<16x32xf32>
    %2 = tpu.iota {dimensions = array<i32: 0>} : vector<8x8xi32>
    %3 = tpu.iota {dimensions = array<i32: 1>} : vector<8x8xi32>
    %4 = arith.cmpi sle, %3, %2 : vector<8x8xi32>
    %5 = vector.shape_cast %4 : vector<8x8xi1> to vector<1x8x8xi1>
    %c0_2 = arith.constant 0 : index
    %c0_3 = arith.constant 0 : index
    %c0_4 = arith.constant 0 : index
    %6 = vector.load %arg2[%c0_2, %c0_3, %c0_4] : memref<2x4x32xf32, #tpu.memory_space<vmem>>, vector<1x4x32xf32>
    %7 = vector.shape_cast %6 : vector<1x4x32xf32> to vector<4x32xf32>
    %8 = vector.extract_strided_slice %7 {offsets = [0, 0], sizes = [1, 32], strides = [1, 1]} : vector<4x32xf32> to vector<1x32xf32>
    %9 = vector.extract_strided_slice %7 {offsets = [1, 0], sizes = [1, 32], strides = [1, 1]} : vector<4x32xf32> to vector<1x32xf32>
    %cst = arith.constant dense<0.000000e+00> : vector<16xf32>
    %10 = vector.multi_reduction <add>, %1, %cst [1] : vector<16x32xf32> to vector<16xf32>
    %11 = vector.shape_cast %10 : vector<16xf32> to vector<16x1xf32>
    %cst_5 = arith.constant 3.200000e+01 : f32
    %12 = vector.broadcast %cst_5 : f32 to vector<16x1xf32>
    %13 = arith.divf %11, %12 : vector<16x1xf32>
    %14 = vector.broadcast %13 : vector<16x1xf32> to vector<16x32xf32>
    %15 = arith.subf %1, %14 : vector<16x32xf32>
    %16 = arith.mulf %15, %15 : vector<16x32xf32>
    %cst_6 = arith.constant dense<0.000000e+00> : vector<16xf32>
    %17 = vector.multi_reduction <add>, %16, %cst_6 [1] : vector<16x32xf32> to vector<16xf32>
    %18 = vector.shape_cast %17 : vector<16xf32> to vector<16x1xf32>
    %cst_7 = arith.constant 3.200000e+01 : f32
    %19 = vector.broadcast %cst_7 : f32 to vector<16x1xf32>
    %20 = arith.divf %18, %19 : vector<16x1xf32>
    %cst_8 = arith.constant 9.99999974E-6 : f32
    %21 = vector.broadcast %cst_8 : f32 to vector<16x1xf32>
    %22 = arith.addf %20, %21 : vector<16x1xf32>
    %23 = math.rsqrt %22 : vector<16x1xf32>
    %24 = vector.broadcast %23 : vector<16x1xf32> to vector<16x32xf32>
    %25 = arith.mulf %15, %24 : vector<16x32xf32>
    %26 = vector.broadcast %8 : vector<1x32xf32> to vector<16x32xf32>
    %27 = arith.mulf %25, %26 : vector<16x32xf32>
    %28 = vector.broadcast %9 : vector<1x32xf32> to vector<16x32xf32>
    %29 = arith.addf %27, %28 : vector<16x32xf32>
    %30 = arith.truncf %29 : vector<16x32xf32> to vector<16x32xbf16>
    %c0_9 = arith.constant 0 : index
    %c0_10 = arith.constant 0 : index
    %c0_11 = arith.constant 0 : index
    %31 = vector.load %arg3[%c0_9, %c0_10, %c0_11] : memref<2x32x96xbf16, #tpu.memory_space<vmem>>, vector<1x32x96xbf16>
    %32 = vector.shape_cast %31 : vector<1x32x96xbf16> to vector<32x96xbf16>
    %cst_12 = arith.constant dense<0.000000e+00> : vector<16x96xf32>
    %33 = tpu.matmul %30, %32, %cst_12 {dimension_numbers = #tpu.dot_dimension_numbers<[1], [0], [0], [1], [0, 0, 1, 1], [], []>} : vector<16x32xbf16>, vector<32x96xbf16>, vector<16x96xf32> -> vector<16x96xf32>
    %c0_13 = arith.constant 0 : index
    %c0_14 = arith.constant 0 : index
    %c0_15 = arith.constant 0 : index
    %34 = vector.load %arg4[%c0_13, %c0_14, %c0_15] : memref<2x1x96xf32, #tpu.memory_space<vmem>>, vector<1x1x96xf32>
    %35 = vector.shape_cast %34 : vector<1x1x96xf32> to vector<1x96xf32>
    %36 = vector.broadcast %35 : vector<1x96xf32> to vector<16x96xf32>
    %37 = arith.addf %33, %36 : vector<16x96xf32>
    %c0_16 = arith.constant 0 : index
    %c0_17 = arith.constant 0 : index
    %c0_18 = arith.constant 0 : index
    %38 = vector.load %arg5[%c0_16, %c0_17, %c0_18] : memref<2x32x32xbf16, #tpu.memory_space<vmem>>, vector<1x32x32xbf16>
    %39 = vector.shape_cast %38 : vector<1x32x32xbf16> to vector<32x32xbf16>
    %cst_19 = arith.constant 0.000000e+00 : f32
    %40 = vector.broadcast %cst_19 : f32 to vector<16x32xf32>
    %41 = vector.extract_strided_slice %37 {offsets = [0, 0], sizes = [16, 16], strides = [1, 1]} : vector<16x96xf32> to vector<16x16xf32>
    %42 = vector.shape_cast %41 : vector<16x16xf32> to vector<2x8x16xf32>
    %43 = arith.truncf %42 : vector<2x8x16xf32> to vector<2x8x16xbf16>
    %44 = vector.extract_strided_slice %37 {offsets = [0, 32], sizes = [16, 16], strides = [1, 1]} : vector<16x96xf32> to vector<16x16xf32>
    %45 = vector.shape_cast %44 : vector<16x16xf32> to vector<2x8x16xf32>
    %46 = arith.truncf %45 : vector<2x8x16xf32> to vector<2x8x16xbf16>
    %47 = vector.extract_strided_slice %37 {offsets = [0, 64], sizes = [16, 16], strides = [1, 1]} : vector<16x96xf32> to vector<16x16xf32>
    %48 = vector.shape_cast %47 : vector<16x16xf32> to vector<2x8x16xf32>
    %49 = arith.truncf %48 : vector<2x8x16xf32> to vector<2x8x16xbf16>
    "tpu.trace_start"() <{level = 10 : i32, message = "btd,bsd->bts"}> : () -> ()
    %cst_20 = arith.constant dense<0.000000e+00> : vector<2x8x8xf32>
    %50 = tpu.matmul %43, %46, %cst_20 {dimension_numbers = #tpu.dot_dimension_numbers<[2], [2], [1], [1], [0, 0, 0, 1, 1, 1], [0], [0]>} : vector<2x8x16xbf16>, vector<2x8x16xbf16>, vector<2x8x8xf32> -> vector<2x8x8xf32>
    "tpu.trace_stop"() : () -> ()
    %cst_21 = arith.constant 2.500000e-01 : f32
    %51 = vector.broadcast %cst_21 : f32 to vector<2x8x8xf32>
    %52 = arith.mulf %50, %51 : vector<2x8x8xf32>
    %cst_22 = arith.constant -1.000000e+30 : f32
    %53 = vector.shape_cast %5 : vector<1x8x8xi1> to vector<1x8x8xi1>
    %54 = vector.broadcast %53 : vector<1x8x8xi1> to vector<2x8x8xi1>
    %55 = vector.broadcast %cst_22 : f32 to vector<2x8x8xf32>
    %56 = arith.select %54, %52, %55 : vector<2x8x8xi1>, vector<2x8x8xf32>
    %cst_23 = arith.constant dense<0xFF800000> : vector<2x8xf32>
    %57 = vector.multi_reduction <maximumf>, %56, %cst_23 [2] : vector<2x8x8xf32> to vector<2x8xf32>
    %58 = vector.shape_cast %57 : vector<2x8xf32> to vector<2x8x1xf32>
    %59 = vector.broadcast %58 : vector<2x8x1xf32> to vector<2x8x8xf32>
    %60 = arith.subf %56, %59 : vector<2x8x8xf32>
    %61 = math.exp %60 : vector<2x8x8xf32>
    %cst_24 = arith.constant dense<0.000000e+00> : vector<2x8xf32>
    %62 = vector.multi_reduction <add>, %61, %cst_24 [2] : vector<2x8x8xf32> to vector<2x8xf32>
    %63 = vector.shape_cast %62 : vector<2x8xf32> to vector<2x8x1xf32>
    %64 = vector.broadcast %63 : vector<2x8x1xf32> to vector<2x8x8xf32>
    %65 = arith.divf %61, %64 : vector<2x8x8xf32>
    %66 = arith.truncf %65 : vector<2x8x8xf32> to vector<2x8x8xbf16>
    "tpu.trace_start"() <{level = 10 : i32, message = "bts,bsd->btd"}> : () -> ()
    %cst_25 = arith.constant dense<0.000000e+00> : vector<2x8x16xf32>
    %67 = tpu.matmul %66, %49, %cst_25 {dimension_numbers = #tpu.dot_dimension_numbers<[2], [1], [1], [2], [0, 0, 0, 1, 1, 2], [0], [0]>} : vector<2x8x8xbf16>, vector<2x8x16xbf16>, vector<2x8x16xf32> -> vector<2x8x16xf32>
    "tpu.trace_stop"() : () -> ()
    %68 = vector.shape_cast %67 : vector<2x8x16xf32> to vector<16x16xf32>
    %69 = arith.truncf %68 : vector<16x16xf32> to vector<16x16xbf16>
    %70 = vector.extract_strided_slice %39 {offsets = [0, 0], sizes = [16, 32], strides = [1, 1]} : vector<32x32xbf16> to vector<16x32xbf16>
    %cst_26 = arith.constant dense<0.000000e+00> : vector<16x32xf32>
    %71 = tpu.matmul %69, %70, %cst_26 {dimension_numbers = #tpu.dot_dimension_numbers<[1], [0], [0], [1], [0, 0, 1, 1], [], []>} : vector<16x16xbf16>, vector<16x32xbf16>, vector<16x32xf32> -> vector<16x32xf32>
    %72 = arith.addf %40, %71 : vector<16x32xf32>
    %73 = vector.extract_strided_slice %37 {offsets = [0, 16], sizes = [16, 16], strides = [1, 1]} : vector<16x96xf32> to vector<16x16xf32>
    %74 = vector.shape_cast %73 : vector<16x16xf32> to vector<2x8x16xf32>
    %75 = arith.truncf %74 : vector<2x8x16xf32> to vector<2x8x16xbf16>
    %76 = vector.extract_strided_slice %37 {offsets = [0, 48], sizes = [16, 16], strides = [1, 1]} : vector<16x96xf32> to vector<16x16xf32>
    %77 = vector.shape_cast %76 : vector<16x16xf32> to vector<2x8x16xf32>
    %78 = arith.truncf %77 : vector<2x8x16xf32> to vector<2x8x16xbf16>
    %79 = vector.extract_strided_slice %37 {offsets = [0, 80], sizes = [16, 16], strides = [1, 1]} : vector<16x96xf32> to vector<16x16xf32>
    %80 = vector.shape_cast %79 : vector<16x16xf32> to vector<2x8x16xf32>
    %81 = arith.truncf %80 : vector<2x8x16xf32> to vector<2x8x16xbf16>
    "tpu.trace_start"() <{level = 10 : i32, message = "btd,bsd->bts"}> : () -> ()
    %cst_27 = arith.constant dense<0.000000e+00> : vector<2x8x8xf32>
    %82 = tpu.matmul %75, %78, %cst_27 {dimension_numbers = #tpu.dot_dimension_numbers<[2], [2], [1], [1], [0, 0, 0, 1, 1, 1], [0], [0]>} : vector<2x8x16xbf16>, vector<2x8x16xbf16>, vector<2x8x8xf32> -> vector<2x8x8xf32>
    "tpu.trace_stop"() : () -> ()
    %cst_28 = arith.constant 2.500000e-01 : f32
    %83 = vector.broadcast %cst_28 : f32 to vector<2x8x8xf32>
    %84 = arith.mulf %82, %83 : vector<2x8x8xf32>
    %cst_29 = arith.constant -1.000000e+30 : f32
    %85 = vector.shape_cast %5 : vector<1x8x8xi1> to vector<1x8x8xi1>
    %86 = vector.broadcast %85 : vector<1x8x8xi1> to vector<2x8x8xi1>
    %87 = vector.broadcast %cst_29 : f32 to vector<2x8x8xf32>
    %88 = arith.select %86, %84, %87 : vector<2x8x8xi1>, vector<2x8x8xf32>
    %cst_30 = arith.constant dense<0xFF800000> : vector<2x8xf32>
    %89 = vector.multi_reduction <maximumf>, %88, %cst_30 [2] : vector<2x8x8xf32> to vector<2x8xf32>
    %90 = vector.shape_cast %89 : vector<2x8xf32> to vector<2x8x1xf32>
    %91 = vector.broadcast %90 : vector<2x8x1xf32> to vector<2x8x8xf32>
    %92 = arith.subf %88, %91 : vector<2x8x8xf32>
    %93 = math.exp %92 : vector<2x8x8xf32>
    %cst_31 = arith.constant dense<0.000000e+00> : vector<2x8xf32>
    %94 = vector.multi_reduction <add>, %93, %cst_31 [2] : vector<2x8x8xf32> to vector<2x8xf32>
    %95 = vector.shape_cast %94 : vector<2x8xf32> to vector<2x8x1xf32>
    %96 = vector.broadcast %95 : vector<2x8x1xf32> to vector<2x8x8xf32>
    %97 = arith.divf %93, %96 : vector<2x8x8xf32>
    %98 = arith.truncf %97 : vector<2x8x8xf32> to vector<2x8x8xbf16>
    "tpu.trace_start"() <{level = 10 : i32, message = "bts,bsd->btd"}> : () -> ()
    %cst_32 = arith.constant dense<0.000000e+00> : vector<2x8x16xf32>
    %99 = tpu.matmul %98, %81, %cst_32 {dimension_numbers = #tpu.dot_dimension_numbers<[2], [1], [1], [2], [0, 0, 0, 1, 1, 2], [0], [0]>} : vector<2x8x8xbf16>, vector<2x8x16xbf16>, vector<2x8x16xf32> -> vector<2x8x16xf32>
    "tpu.trace_stop"() : () -> ()
    %100 = vector.shape_cast %99 : vector<2x8x16xf32> to vector<16x16xf32>
    %101 = arith.truncf %100 : vector<16x16xf32> to vector<16x16xbf16>
    %102 = vector.extract_strided_slice %39 {offsets = [16, 0], sizes = [16, 32], strides = [1, 1]} : vector<32x32xbf16> to vector<16x32xbf16>
    %cst_33 = arith.constant dense<0.000000e+00> : vector<16x32xf32>
    %103 = tpu.matmul %101, %102, %cst_33 {dimension_numbers = #tpu.dot_dimension_numbers<[1], [0], [0], [1], [0, 0, 1, 1], [], []>} : vector<16x16xbf16>, vector<16x32xbf16>, vector<16x32xf32> -> vector<16x32xf32>
    %104 = arith.addf %72, %103 : vector<16x32xf32>
    %105 = arith.addf %1, %104 : vector<16x32xf32>
    %c0_34 = arith.constant 0 : index
    %c0_35 = arith.constant 0 : index
    %c0_36 = arith.constant 0 : index
    %106 = vector.load %arg6[%c0_34, %c0_35, %c0_36] : memref<2x1x32xf32, #tpu.memory_space<vmem>>, vector<1x1x32xf32>
    %107 = vector.shape_cast %106 : vector<1x1x32xf32> to vector<1x32xf32>
    %108 = vector.broadcast %107 : vector<1x32xf32> to vector<16x32xf32>
    %109 = arith.addf %105, %108 : vector<16x32xf32>
    %110 = vector.extract_strided_slice %7 {offsets = [2, 0], sizes = [1, 32], strides = [1, 1]} : vector<4x32xf32> to vector<1x32xf32>
    %111 = vector.extract_strided_slice %7 {offsets = [3, 0], sizes = [1, 32], strides = [1, 1]} : vector<4x32xf32> to vector<1x32xf32>
    %cst_37 = arith.constant dense<0.000000e+00> : vector<16xf32>
    %112 = vector.multi_reduction <add>, %109, %cst_37 [1] : vector<16x32xf32> to vector<16xf32>
    %113 = vector.shape_cast %112 : vector<16xf32> to vector<16x1xf32>
    %cst_38 = arith.constant 3.200000e+01 : f32
    %114 = vector.broadcast %cst_38 : f32 to vector<16x1xf32>
    %115 = arith.divf %113, %114 : vector<16x1xf32>
    %116 = vector.broadcast %115 : vector<16x1xf32> to vector<16x32xf32>
    %117 = arith.subf %109, %116 : vector<16x32xf32>
    %118 = arith.mulf %117, %117 : vector<16x32xf32>
    %cst_39 = arith.constant dense<0.000000e+00> : vector<16xf32>
    %119 = vector.multi_reduction <add>, %118, %cst_39 [1] : vector<16x32xf32> to vector<16xf32>
    %120 = vector.shape_cast %119 : vector<16xf32> to vector<16x1xf32>
    %cst_40 = arith.constant 3.200000e+01 : f32
    %121 = vector.broadcast %cst_40 : f32 to vector<16x1xf32>
    %122 = arith.divf %120, %121 : vector<16x1xf32>
    %cst_41 = arith.constant 9.99999974E-6 : f32
    %123 = vector.broadcast %cst_41 : f32 to vector<16x1xf32>
    %124 = arith.addf %122, %123 : vector<16x1xf32>
    %125 = math.rsqrt %124 : vector<16x1xf32>
    %126 = vector.broadcast %125 : vector<16x1xf32> to vector<16x32xf32>
    %127 = arith.mulf %117, %126 : vector<16x32xf32>
    %128 = vector.broadcast %110 : vector<1x32xf32> to vector<16x32xf32>
    %129 = arith.mulf %127, %128 : vector<16x32xf32>
    %130 = vector.broadcast %111 : vector<1x32xf32> to vector<16x32xf32>
    %131 = arith.addf %129, %130 : vector<16x32xf32>
    %132 = arith.truncf %131 : vector<16x32xf32> to vector<16x32xbf16>
    %c0_42 = arith.constant 0 : index
    %c0_43 = arith.constant 0 : index
    %c0_44 = arith.constant 0 : index
    %133 = vector.load %arg7[%c0_42, %c0_43, %c0_44] : memref<2x32x128xbf16, #tpu.memory_space<vmem>>, vector<1x32x128xbf16>
    %134 = vector.shape_cast %133 : vector<1x32x128xbf16> to vector<32x128xbf16>
    %cst_45 = arith.constant dense<0.000000e+00> : vector<16x128xf32>
    %135 = tpu.matmul %132, %134, %cst_45 {dimension_numbers = #tpu.dot_dimension_numbers<[1], [0], [0], [1], [0, 0, 1, 1], [], []>} : vector<16x32xbf16>, vector<32x128xbf16>, vector<16x128xf32> -> vector<16x128xf32>
    %c0_46 = arith.constant 0 : index
    %c0_47 = arith.constant 0 : index
    %c0_48 = arith.constant 0 : index
    %136 = vector.load %arg8[%c0_46, %c0_47, %c0_48] : memref<2x1x128xf32, #tpu.memory_space<vmem>>, vector<1x1x128xf32>
    %137 = vector.shape_cast %136 : vector<1x1x128xf32> to vector<1x128xf32>
    %138 = vector.broadcast %137 : vector<1x128xf32> to vector<16x128xf32>
    %139 = arith.addf %135, %138 : vector<16x128xf32>
    %cst_49 = arith.constant 5.000000e-01 : f32
    %140 = vector.broadcast %cst_49 : f32 to vector<16x128xf32>
    %141 = arith.mulf %140, %139 : vector<16x128xf32>
    %cst_50 = arith.constant 4.471500e-02 : f32
    %142 = vector.broadcast %cst_50 : f32 to vector<16x128xf32>
    %143 = arith.mulf %142, %139 : vector<16x128xf32>
    %144 = arith.mulf %143, %139 : vector<16x128xf32>
    %145 = arith.mulf %144, %139 : vector<16x128xf32>
    %146 = arith.addf %139, %145 : vector<16x128xf32>
    %cst_51 = arith.constant 0.797884583 : f32
    %147 = vector.broadcast %cst_51 : f32 to vector<16x128xf32>
    %148 = arith.mulf %147, %146 : vector<16x128xf32>
    %149 = math.tanh %148 : vector<16x128xf32>
    %cst_52 = arith.constant 1.000000e+00 : f32
    %150 = vector.broadcast %cst_52 : f32 to vector<16x128xf32>
    %151 = arith.addf %150, %149 : vector<16x128xf32>
    %152 = arith.mulf %141, %151 : vector<16x128xf32>
    %153 = arith.truncf %152 : vector<16x128xf32> to vector<16x128xbf16>
    %c0_53 = arith.constant 0 : index
    %c0_54 = arith.constant 0 : index
    %c0_55 = arith.constant 0 : index
    %154 = vector.load %arg9[%c0_53, %c0_54, %c0_55] : memref<2x128x32xbf16, #tpu.memory_space<vmem>>, vector<1x128x32xbf16>
    %155 = vector.shape_cast %154 : vector<1x128x32xbf16> to vector<128x32xbf16>
    %cst_56 = arith.constant dense<0.000000e+00> : vector<16x32xf32>
    %156 = tpu.matmul %153, %155, %cst_56 {dimension_numbers = #tpu.dot_dimension_numbers<[1], [0], [0], [1], [0, 0, 1, 1], [], []>} : vector<16x128xbf16>, vector<128x32xbf16>, vector<16x32xf32> -> vector<16x32xf32>
    %157 = arith.addf %109, %156 : vector<16x32xf32>
    %c0_57 = arith.constant 0 : index
    %c0_58 = arith.constant 0 : index
    %c0_59 = arith.constant 0 : index
    %158 = vector.load %arg10[%c0_57, %c0_58, %c0_59] : memref<2x1x32xf32, #tpu.memory_space<vmem>>, vector<1x1x32xf32>
    %159 = vector.shape_cast %158 : vector<1x1x32xf32> to vector<1x32xf32>
    %160 = vector.broadcast %159 : vector<1x32xf32> to vector<16x32xf32>
    %161 = arith.addf %157, %160 : vector<16x32xf32>
    %c1 = arith.constant 1 : index
    %c0_60 = arith.constant 0 : index
    %c0_61 = arith.constant 0 : index
    %162 = vector.load %arg2[%c1, %c0_60, %c0_61] : memref<2x4x32xf32, #tpu.memory_space<vmem>>, vector<1x4x32xf32>
    %163 = vector.shape_cast %162 : vector<1x4x32xf32> to vector<4x32xf32>
    %164 = vector.extract_strided_slice %163 {offsets = [0, 0], sizes = [1, 32], strides = [1, 1]} : vector<4x32xf32> to vector<1x32xf32>
    %165 = vector.extract_strided_slice %163 {offsets = [1, 0], sizes = [1, 32], strides = [1, 1]} : vector<4x32xf32> to vector<1x32xf32>
    %cst_62 = arith.constant dense<0.000000e+00> : vector<16xf32>
    %166 = vector.multi_reduction <add>, %161, %cst_62 [1] : vector<16x32xf32> to vector<16xf32>
    %167 = vector.shape_cast %166 : vector<16xf32> to vector<16x1xf32>
    %cst_63 = arith.constant 3.200000e+01 : f32
    %168 = vector.broadcast %cst_63 : f32 to vector<16x1xf32>
    %169 = arith.divf %167, %168 : vector<16x1xf32>
    %170 = vector.broadcast %169 : vector<16x1xf32> to vector<16x32xf32>
    %171 = arith.subf %161, %170 : vector<16x32xf32>
    %172 = arith.mulf %171, %171 : vector<16x32xf32>
    %cst_64 = arith.constant dense<0.000000e+00> : vector<16xf32>
    %173 = vector.multi_reduction <add>, %172, %cst_64 [1] : vector<16x32xf32> to vector<16xf32>
    %174 = vector.shape_cast %173 : vector<16xf32> to vector<16x1xf32>
    %cst_65 = arith.constant 3.200000e+01 : f32
    %175 = vector.broadcast %cst_65 : f32 to vector<16x1xf32>
    %176 = arith.divf %174, %175 : vector<16x1xf32>
    %cst_66 = arith.constant 9.99999974E-6 : f32
    %177 = vector.broadcast %cst_66 : f32 to vector<16x1xf32>
    %178 = arith.addf %176, %177 : vector<16x1xf32>
    %179 = math.rsqrt %178 : vector<16x1xf32>
    %180 = vector.broadcast %179 : vector<16x1xf32> to vector<16x32xf32>
    %181 = arith.mulf %171, %180 : vector<16x32xf32>
    %182 = vector.broadcast %164 : vector<1x32xf32> to vector<16x32xf32>
    %183 = arith.mulf %181, %182 : vector<16x32xf32>
    %184 = vector.broadcast %165 : vector<1x32xf32> to vector<16x32xf32>
    %185 = arith.addf %183, %184 : vector<16x32xf32>
    %186 = arith.truncf %185 : vector<16x32xf32> to vector<16x32xbf16>
    %c1_67 = arith.constant 1 : index
    %c0_68 = arith.constant 0 : index
    %c0_69 = arith.constant 0 : index
    %187 = vector.load %arg3[%c1_67, %c0_68, %c0_69] : memref<2x32x96xbf16, #tpu.memory_space<vmem>>, vector<1x32x96xbf16>
    %188 = vector.shape_cast %187 : vector<1x32x96xbf16> to vector<32x96xbf16>
    %cst_70 = arith.constant dense<0.000000e+00> : vector<16x96xf32>
    %189 = tpu.matmul %186, %188, %cst_70 {dimension_numbers = #tpu.dot_dimension_numbers<[1], [0], [0], [1], [0, 0, 1, 1], [], []>} : vector<16x32xbf16>, vector<32x96xbf16>, vector<16x96xf32> -> vector<16x96xf32>
    %c1_71 = arith.constant 1 : index
    %c0_72 = arith.constant 0 : index
    %c0_73 = arith.constant 0 : index
    %190 = vector.load %arg4[%c1_71, %c0_72, %c0_73] : memref<2x1x96xf32, #tpu.memory_space<vmem>>, vector<1x1x96xf32>
    %191 = vector.shape_cast %190 : vector<1x1x96xf32> to vector<1x96xf32>
    %192 = vector.broadcast %191 : vector<1x96xf32> to vector<16x96xf32>
    %193 = arith.addf %189, %192 : vector<16x96xf32>
    %c1_74 = arith.constant 1 : index
    %c0_75 = arith.constant 0 : index
    %c0_76 = arith.constant 0 : index
    %194 = vector.load %arg5[%c1_74, %c0_75, %c0_76] : memref<2x32x32xbf16, #tpu.memory_space<vmem>>, vector<1x32x32xbf16>
    %195 = vector.shape_cast %194 : vector<1x32x32xbf16> to vector<32x32xbf16>
    %cst_77 = arith.constant 0.000000e+00 : f32
    %196 = vector.broadcast %cst_77 : f32 to vector<16x32xf32>
    %197 = vector.extract_strided_slice %193 {offsets = [0, 0], sizes = [16, 16], strides = [1, 1]} : vector<16x96xf32> to vector<16x16xf32>
    %198 = vector.shape_cast %197 : vector<16x16xf32> to vector<2x8x16xf32>
    %199 = arith.truncf %198 : vector<2x8x16xf32> to vector<2x8x16xbf16>
    %200 = vector.extract_strided_slice %193 {offsets = [0, 32], sizes = [16, 16], strides = [1, 1]} : vector<16x96xf32> to vector<16x16xf32>
    %201 = vector.shape_cast %200 : vector<16x16xf32> to vector<2x8x16xf32>
    %202 = arith.truncf %201 : vector<2x8x16xf32> to vector<2x8x16xbf16>
    %203 = vector.extract_strided_slice %193 {offsets = [0, 64], sizes = [16, 16], strides = [1, 1]} : vector<16x96xf32> to vector<16x16xf32>
    %204 = vector.shape_cast %203 : vector<16x16xf32> to vector<2x8x16xf32>
    %205 = arith.truncf %204 : vector<2x8x16xf32> to vector<2x8x16xbf16>
    "tpu.trace_start"() <{level = 10 : i32, message = "btd,bsd->bts"}> : () -> ()
    %cst_78 = arith.constant dense<0.000000e+00> : vector<2x8x8xf32>
    %206 = tpu.matmul %199, %202, %cst_78 {dimension_numbers = #tpu.dot_dimension_numbers<[2], [2], [1], [1], [0, 0, 0, 1, 1, 1], [0], [0]>} : vector<2x8x16xbf16>, vector<2x8x16xbf16>, vector<2x8x8xf32> -> vector<2x8x8xf32>
    "tpu.trace_stop"() : () -> ()
    %cst_79 = arith.constant 2.500000e-01 : f32
    %207 = vector.broadcast %cst_79 : f32 to vector<2x8x8xf32>
    %208 = arith.mulf %206, %207 : vector<2x8x8xf32>
    %cst_80 = arith.constant -1.000000e+30 : f32
    %209 = vector.shape_cast %5 : vector<1x8x8xi1> to vector<1x8x8xi1>
    %210 = vector.broadcast %209 : vector<1x8x8xi1> to vector<2x8x8xi1>
    %211 = vector.broadcast %cst_80 : f32 to vector<2x8x8xf32>
    %212 = arith.select %210, %208, %211 : vector<2x8x8xi1>, vector<2x8x8xf32>
    %cst_81 = arith.constant dense<0xFF800000> : vector<2x8xf32>
    %213 = vector.multi_reduction <maximumf>, %212, %cst_81 [2] : vector<2x8x8xf32> to vector<2x8xf32>
    %214 = vector.shape_cast %213 : vector<2x8xf32> to vector<2x8x1xf32>
    %215 = vector.broadcast %214 : vector<2x8x1xf32> to vector<2x8x8xf32>
    %216 = arith.subf %212, %215 : vector<2x8x8xf32>
    %217 = math.exp %216 : vector<2x8x8xf32>
    %cst_82 = arith.constant dense<0.000000e+00> : vector<2x8xf32>
    %218 = vector.multi_reduction <add>, %217, %cst_82 [2] : vector<2x8x8xf32> to vector<2x8xf32>
    %219 = vector.shape_cast %218 : vector<2x8xf32> to vector<2x8x1xf32>
    %220 = vector.broadcast %219 : vector<2x8x1xf32> to vector<2x8x8xf32>
    %221 = arith.divf %217, %220 : vector<2x8x8xf32>
    %222 = arith.truncf %221 : vector<2x8x8xf32> to vector<2x8x8xbf16>
    "tpu.trace_start"() <{level = 10 : i32, message = "bts,bsd->btd"}> : () -> ()
    %cst_83 = arith.constant dense<0.000000e+00> : vector<2x8x16xf32>
    %223 = tpu.matmul %222, %205, %cst_83 {dimension_numbers = #tpu.dot_dimension_numbers<[2], [1], [1], [2], [0, 0, 0, 1, 1, 2], [0], [0]>} : vector<2x8x8xbf16>, vector<2x8x16xbf16>, vector<2x8x16xf32> -> vector<2x8x16xf32>
    "tpu.trace_stop"() : () -> ()
    %224 = vector.shape_cast %223 : vector<2x8x16xf32> to vector<16x16xf32>
    %225 = arith.truncf %224 : vector<16x16xf32> to vector<16x16xbf16>
    %226 = vector.extract_strided_slice %195 {offsets = [0, 0], sizes = [16, 32], strides = [1, 1]} : vector<32x32xbf16> to vector<16x32xbf16>
    %cst_84 = arith.constant dense<0.000000e+00> : vector<16x32xf32>
    %227 = tpu.matmul %225, %226, %cst_84 {dimension_numbers = #tpu.dot_dimension_numbers<[1], [0], [0], [1], [0, 0, 1, 1], [], []>} : vector<16x16xbf16>, vector<16x32xbf16>, vector<16x32xf32> -> vector<16x32xf32>
    %228 = arith.addf %196, %227 : vector<16x32xf32>
    %229 = vector.extract_strided_slice %193 {offsets = [0, 16], sizes = [16, 16], strides = [1, 1]} : vector<16x96xf32> to vector<16x16xf32>
    %230 = vector.shape_cast %229 : vector<16x16xf32> to vector<2x8x16xf32>
    %231 = arith.truncf %230 : vector<2x8x16xf32> to vector<2x8x16xbf16>
    %232 = vector.extract_strided_slice %193 {offsets = [0, 48], sizes = [16, 16], strides = [1, 1]} : vector<16x96xf32> to vector<16x16xf32>
    %233 = vector.shape_cast %232 : vector<16x16xf32> to vector<2x8x16xf32>
    %234 = arith.truncf %233 : vector<2x8x16xf32> to vector<2x8x16xbf16>
    %235 = vector.extract_strided_slice %193 {offsets = [0, 80], sizes = [16, 16], strides = [1, 1]} : vector<16x96xf32> to vector<16x16xf32>
    %236 = vector.shape_cast %235 : vector<16x16xf32> to vector<2x8x16xf32>
    %237 = arith.truncf %236 : vector<2x8x16xf32> to vector<2x8x16xbf16>
    "tpu.trace_start"() <{level = 10 : i32, message = "btd,bsd->bts"}> : () -> ()
    %cst_85 = arith.constant dense<0.000000e+00> : vector<2x8x8xf32>
    %238 = tpu.matmul %231, %234, %cst_85 {dimension_numbers = #tpu.dot_dimension_numbers<[2], [2], [1], [1], [0, 0, 0, 1, 1, 1], [0], [0]>} : vector<2x8x16xbf16>, vector<2x8x16xbf16>, vector<2x8x8xf32> -> vector<2x8x8xf32>
    "tpu.trace_stop"() : () -> ()
    %cst_86 = arith.constant 2.500000e-01 : f32
    %239 = vector.broadcast %cst_86 : f32 to vector<2x8x8xf32>
    %240 = arith.mulf %238, %239 : vector<2x8x8xf32>
    %cst_87 = arith.constant -1.000000e+30 : f32
    %241 = vector.shape_cast %5 : vector<1x8x8xi1> to vector<1x8x8xi1>
    %242 = vector.broadcast %241 : vector<1x8x8xi1> to vector<2x8x8xi1>
    %243 = vector.broadcast %cst_87 : f32 to vector<2x8x8xf32>
    %244 = arith.select %242, %240, %243 : vector<2x8x8xi1>, vector<2x8x8xf32>
    %cst_88 = arith.constant dense<0xFF800000> : vector<2x8xf32>
    %245 = vector.multi_reduction <maximumf>, %244, %cst_88 [2] : vector<2x8x8xf32> to vector<2x8xf32>
    %246 = vector.shape_cast %245 : vector<2x8xf32> to vector<2x8x1xf32>
    %247 = vector.broadcast %246 : vector<2x8x1xf32> to vector<2x8x8xf32>
    %248 = arith.subf %244, %247 : vector<2x8x8xf32>
    %249 = math.exp %248 : vector<2x8x8xf32>
    %cst_89 = arith.constant dense<0.000000e+00> : vector<2x8xf32>
    %250 = vector.multi_reduction <add>, %249, %cst_89 [2] : vector<2x8x8xf32> to vector<2x8xf32>
    %251 = vector.shape_cast %250 : vector<2x8xf32> to vector<2x8x1xf32>
    %252 = vector.broadcast %251 : vector<2x8x1xf32> to vector<2x8x8xf32>
    %253 = arith.divf %249, %252 : vector<2x8x8xf32>
    %254 = arith.truncf %253 : vector<2x8x8xf32> to vector<2x8x8xbf16>
    "tpu.trace_start"() <{level = 10 : i32, message = "bts,bsd->btd"}> : () -> ()
    %cst_90 = arith.constant dense<0.000000e+00> : vector<2x8x16xf32>
    %255 = tpu.matmul %254, %237, %cst_90 {dimension_numbers = #tpu.dot_dimension_numbers<[2], [1], [1], [2], [0, 0, 0, 1, 1, 2], [0], [0]>} : vector<2x8x8xbf16>, vector<2x8x16xbf16>, vector<2x8x16xf32> -> vector<2x8x16xf32>
    "tpu.trace_stop"() : () -> ()
    %256 = vector.shape_cast %255 : vector<2x8x16xf32> to vector<16x16xf32>
    %257 = arith.truncf %256 : vector<16x16xf32> to vector<16x16xbf16>
    %258 = vector.extract_strided_slice %195 {offsets = [16, 0], sizes = [16, 32], strides = [1, 1]} : vector<32x32xbf16> to vector<16x32xbf16>
    %cst_91 = arith.constant dense<0.000000e+00> : vector<16x32xf32>
    %259 = tpu.matmul %257, %258, %cst_91 {dimension_numbers = #tpu.dot_dimension_numbers<[1], [0], [0], [1], [0, 0, 1, 1], [], []>} : vector<16x16xbf16>, vector<16x32xbf16>, vector<16x32xf32> -> vector<16x32xf32>
    %260 = arith.addf %228, %259 : vector<16x32xf32>
    %261 = arith.addf %161, %260 : vector<16x32xf32>
    %c1_92 = arith.constant 1 : index
    %c0_93 = arith.constant 0 : index
    %c0_94 = arith.constant 0 : index
    %262 = vector.load %arg6[%c1_92, %c0_93, %c0_94] : memref<2x1x32xf32, #tpu.memory_space<vmem>>, vector<1x1x32xf32>
    %263 = vector.shape_cast %262 : vector<1x1x32xf32> to vector<1x32xf32>
    %264 = vector.broadcast %263 : vector<1x32xf32> to vector<16x32xf32>
    %265 = arith.addf %261, %264 : vector<16x32xf32>
    %266 = vector.extract_strided_slice %163 {offsets = [2, 0], sizes = [1, 32], strides = [1, 1]} : vector<4x32xf32> to vector<1x32xf32>
    %267 = vector.extract_strided_slice %163 {offsets = [3, 0], sizes = [1, 32], strides = [1, 1]} : vector<4x32xf32> to vector<1x32xf32>
    %cst_95 = arith.constant dense<0.000000e+00> : vector<16xf32>
    %268 = vector.multi_reduction <add>, %265, %cst_95 [1] : vector<16x32xf32> to vector<16xf32>
    %269 = vector.shape_cast %268 : vector<16xf32> to vector<16x1xf32>
    %cst_96 = arith.constant 3.200000e+01 : f32
    %270 = vector.broadcast %cst_96 : f32 to vector<16x1xf32>
    %271 = arith.divf %269, %270 : vector<16x1xf32>
    %272 = vector.broadcast %271 : vector<16x1xf32> to vector<16x32xf32>
    %273 = arith.subf %265, %272 : vector<16x32xf32>
    %274 = arith.mulf %273, %273 : vector<16x32xf32>
    %cst_97 = arith.constant dense<0.000000e+00> : vector<16xf32>
    %275 = vector.multi_reduction <add>, %274, %cst_97 [1] : vector<16x32xf32> to vector<16xf32>
    %276 = vector.shape_cast %275 : vector<16xf32> to vector<16x1xf32>
    %cst_98 = arith.constant 3.200000e+01 : f32
    %277 = vector.broadcast %cst_98 : f32 to vector<16x1xf32>
    %278 = arith.divf %276, %277 : vector<16x1xf32>
    %cst_99 = arith.constant 9.99999974E-6 : f32
    %279 = vector.broadcast %cst_99 : f32 to vector<16x1xf32>
    %280 = arith.addf %278, %279 : vector<16x1xf32>
    %281 = math.rsqrt %280 : vector<16x1xf32>
    %282 = vector.broadcast %281 : vector<16x1xf32> to vector<16x32xf32>
    %283 = arith.mulf %273, %282 : vector<16x32xf32>
    %284 = vector.broadcast %266 : vector<1x32xf32> to vector<16x32xf32>
    %285 = arith.mulf %283, %284 : vector<16x32xf32>
    %286 = vector.broadcast %267 : vector<1x32xf32> to vector<16x32xf32>
    %287 = arith.addf %285, %286 : vector<16x32xf32>
    %288 = arith.truncf %287 : vector<16x32xf32> to vector<16x32xbf16>
    %c1_100 = arith.constant 1 : index
    %c0_101 = arith.constant 0 : index
    %c0_102 = arith.constant 0 : index
    %289 = vector.load %arg7[%c1_100, %c0_101, %c0_102] : memref<2x32x128xbf16, #tpu.memory_space<vmem>>, vector<1x32x128xbf16>
    %290 = vector.shape_cast %289 : vector<1x32x128xbf16> to vector<32x128xbf16>
    %cst_103 = arith.constant dense<0.000000e+00> : vector<16x128xf32>
    %291 = tpu.matmul %288, %290, %cst_103 {dimension_numbers = #tpu.dot_dimension_numbers<[1], [0], [0], [1], [0, 0, 1, 1], [], []>} : vector<16x32xbf16>, vector<32x128xbf16>, vector<16x128xf32> -> vector<16x128xf32>
    %c1_104 = arith.constant 1 : index
    %c0_105 = arith.constant 0 : index
    %c0_106 = arith.constant 0 : index
    %292 = vector.load %arg8[%c1_104, %c0_105, %c0_106] : memref<2x1x128xf32, #tpu.memory_space<vmem>>, vector<1x1x128xf32>
    %293 = vector.shape_cast %292 : vector<1x1x128xf32> to vector<1x128xf32>
    %294 = vector.broadcast %293 : vector<1x128xf32> to vector<16x128xf32>
    %295 = arith.addf %291, %294 : vector<16x128xf32>
    %cst_107 = arith.constant 5.000000e-01 : f32
    %296 = vector.broadcast %cst_107 : f32 to vector<16x128xf32>
    %297 = arith.mulf %296, %295 : vector<16x128xf32>
    %cst_108 = arith.constant 4.471500e-02 : f32
    %298 = vector.broadcast %cst_108 : f32 to vector<16x128xf32>
    %299 = arith.mulf %298, %295 : vector<16x128xf32>
    %300 = arith.mulf %299, %295 : vector<16x128xf32>
    %301 = arith.mulf %300, %295 : vector<16x128xf32>
    %302 = arith.addf %295, %301 : vector<16x128xf32>
    %cst_109 = arith.constant 0.797884583 : f32
    %303 = vector.broadcast %cst_109 : f32 to vector<16x128xf32>
    %304 = arith.mulf %303, %302 : vector<16x128xf32>
    %305 = math.tanh %304 : vector<16x128xf32>
    %cst_110 = arith.constant 1.000000e+00 : f32
    %306 = vector.broadcast %cst_110 : f32 to vector<16x128xf32>
    %307 = arith.addf %306, %305 : vector<16x128xf32>
    %308 = arith.mulf %297, %307 : vector<16x128xf32>
    %309 = arith.truncf %308 : vector<16x128xf32> to vector<16x128xbf16>
    %c1_111 = arith.constant 1 : index
    %c0_112 = arith.constant 0 : index
    %c0_113 = arith.constant 0 : index
    %310 = vector.load %arg9[%c1_111, %c0_112, %c0_113] : memref<2x128x32xbf16, #tpu.memory_space<vmem>>, vector<1x128x32xbf16>
    %311 = vector.shape_cast %310 : vector<1x128x32xbf16> to vector<128x32xbf16>
    %cst_114 = arith.constant dense<0.000000e+00> : vector<16x32xf32>
    %312 = tpu.matmul %309, %311, %cst_114 {dimension_numbers = #tpu.dot_dimension_numbers<[1], [0], [0], [1], [0, 0, 1, 1], [], []>} : vector<16x128xbf16>, vector<128x32xbf16>, vector<16x32xf32> -> vector<16x32xf32>
    %313 = arith.addf %265, %312 : vector<16x32xf32>
    %c1_115 = arith.constant 1 : index
    %c0_116 = arith.constant 0 : index
    %c0_117 = arith.constant 0 : index
    %314 = vector.load %arg10[%c1_115, %c0_116, %c0_117] : memref<2x1x32xf32, #tpu.memory_space<vmem>>, vector<1x1x32xf32>
    %315 = vector.shape_cast %314 : vector<1x1x32xf32> to vector<1x32xf32>
    %316 = vector.broadcast %315 : vector<1x32xf32> to vector<16x32xf32>
    %317 = arith.addf %313, %316 : vector<16x32xf32>
    %c0_118 = arith.constant 0 : index
    %c0_119 = arith.constant 0 : index
    %318 = vector.load %arg11[%c0_118, %c0_119] : memref<2x32xf32, #tpu.memory_space<vmem>>, vector<2x32xf32>
    %319 = vector.extract_strided_slice %318 {offsets = [0, 0], sizes = [1, 32], strides = [1, 1]} : vector<2x32xf32> to vector<1x32xf32>
    %320 = vector.extract_strided_slice %318 {offsets = [1, 0], sizes = [1, 32], strides = [1, 1]} : vector<2x32xf32> to vector<1x32xf32>
    %cst_120 = arith.constant dense<0.000000e+00> : vector<16xf32>
    %321 = vector.multi_reduction <add>, %317, %cst_120 [1] : vector<16x32xf32> to vector<16xf32>
    %322 = vector.shape_cast %321 : vector<16xf32> to vector<16x1xf32>
    %cst_121 = arith.constant 3.200000e+01 : f32
    %323 = vector.broadcast %cst_121 : f32 to vector<16x1xf32>
    %324 = arith.divf %322, %323 : vector<16x1xf32>
    %325 = vector.broadcast %324 : vector<16x1xf32> to vector<16x32xf32>
    %326 = arith.subf %317, %325 : vector<16x32xf32>
    %327 = arith.mulf %326, %326 : vector<16x32xf32>
    %cst_122 = arith.constant dense<0.000000e+00> : vector<16xf32>
    %328 = vector.multi_reduction <add>, %327, %cst_122 [1] : vector<16x32xf32> to vector<16xf32>
    %329 = vector.shape_cast %328 : vector<16xf32> to vector<16x1xf32>
    %cst_123 = arith.constant 3.200000e+01 : f32
    %330 = vector.broadcast %cst_123 : f32 to vector<16x1xf32>
    %331 = arith.divf %329, %330 : vector<16x1xf32>
    %cst_124 = arith.constant 9.99999974E-6 : f32
    %332 = vector.broadcast %cst_124 : f32 to vector<16x1xf32>
    %333 = arith.addf %331, %332 : vector<16x1xf32>
    %334 = math.rsqrt %333 : vector<16x1xf32>
    %335 = vector.broadcast %334 : vector<16x1xf32> to vector<16x32xf32>
    %336 = arith.mulf %326, %335 : vector<16x32xf32>
    %337 = vector.broadcast %319 : vector<1x32xf32> to vector<16x32xf32>
    %338 = arith.mulf %336, %337 : vector<16x32xf32>
    %339 = vector.broadcast %320 : vector<1x32xf32> to vector<16x32xf32>
    %340 = arith.addf %338, %339 : vector<16x32xf32>
    %341 = arith.truncf %340 : vector<16x32xf32> to vector<16x32xbf16>
    %c0_125 = arith.constant 0 : index
    %c0_126 = arith.constant 0 : index
    %342 = vector.load %arg12[%c0_125, %c0_126] : memref<32x128xbf16, #tpu.memory_space<vmem>>, vector<32x128xbf16>
    %cst_127 = arith.constant dense<0.000000e+00> : vector<16x128xf32>
    %343 = tpu.matmul %341, %342, %cst_127 {dimension_numbers = #tpu.dot_dimension_numbers<[1], [0], [0], [1], [0, 0, 1, 1], [], []>} : vector<16x32xbf16>, vector<32x128xbf16>, vector<16x128xf32> -> vector<16x128xf32>
    %c0_128 = arith.constant 0 : index
    %c0_129 = arith.constant 0 : index
    %344 = vector.load %arg13[%c0_128, %c0_129] : memref<16x128xf32, #tpu.memory_space<vmem>>, vector<16x128xf32>
    tpu.vector_store %arg13[%c0_128, %c0_129], %343 {strides = array<i32>} : memref<16x128xf32, #tpu.memory_space<vmem>>, vector<16x128xf32>,
    return
  }
  func.func @transform_0(%arg0: i32) -> (i32, i32, i32) {
    %c0_i32 = arith.constant 0 : i32
    %c0_i32_0 = arith.constant 0 : i32
    %c0_i32_1 = arith.constant 0 : i32
    %c0_i32_2 = arith.constant 0 : i32
    return %c0_i32, %c0_i32_0, %c0_i32_1 : i32, i32, i32
  }
  func.func @transform_1(%arg0: i32) -> (i32, i32, i32) {
    %c0_i32 = arith.constant 0 : i32
    %c0_i32_0 = arith.constant 0 : i32
    %c0_i32_1 = arith.constant 0 : i32
    %c0_i32_2 = arith.constant 0 : i32
    return %c0_i32, %c0_i32_0, %c0_i32_1 : i32, i32, i32
  }
  func.func @transform_2(%arg0: i32) -> (i32, i32, i32) {
    %c0_i32 = arith.constant 0 : i32
    %c0_i32_0 = arith.constant 0 : i32
    %c0_i32_1 = arith.constant 0 : i32
    %c0_i32_2 = arith.constant 0 : i32
    return %c0_i32, %c0_i32_0, %c0_i32_1 : i32, i32, i32
  }
  func.func @transform_3(%arg0: i32) -> (i32, i32, i32) {
    %c0_i32 = arith.constant 0 : i32
    %c0_i32_0 = arith.constant 0 : i32
    %c0_i32_1 = arith.constant 0 : i32
    %c0_i32_2 = arith.constant 0 : i32
    return %c0_i32, %c0_i32_0, %c0_i32_1 : i32, i32, i32
  }
  func.func @transform_4(%arg0: i32) -> (i32, i32, i32) {
    %c0_i32 = arith.constant 0 : i32
    %c0_i32_0 = arith.constant 0 : i32
    %c0_i32_1 = arith.constant 0 : i32
    %c0_i32_2 = arith.constant 0 : i32
    return %c0_i32, %c0_i32_0, %c0_i32_1 : i32, i32, i32
  }
  func.func @transform_5(%arg0: i32) -> (i32, i32, i32) {
    %c0_i32 = arith.constant 0 : i32
    %c0_i32_0 = arith.constant 0 : i32
    %c0_i32_1 = arith.constant 0 : i32
    %c0_i32_2 = arith.constant 0 : i32
    return %c0_i32, %c0_i32_0, %c0_i32_1 : i32, i32, i32
  }
  func.func @transform_6(%arg0: i32) -> (i32, i32, i32) {
    %c0_i32 = arith.constant 0 : i32
    %c0_i32_0 = arith.constant 0 : i32
    %c0_i32_1 = arith.constant 0 : i32
    %c0_i32_2 = arith.constant 0 : i32
    return %c0_i32, %c0_i32_0, %c0_i32_1 : i32, i32, i32
  }
  func.func @transform_7(%arg0: i32) -> (i32, i32, i32) {
    %c0_i32 = arith.constant 0 : i32
    %c0_i32_0 = arith.constant 0 : i32
    %c0_i32_1 = arith.constant 0 : i32
    %c0_i32_2 = arith.constant 0 : i32
    return %c0_i32, %c0_i32_0, %c0_i32_1 : i32, i32, i32
  }
  func.func @transform_8(%arg0: i32) -> (i32, i32, i32) {
    %c0_i32 = arith.constant 0 : i32
    %c0_i32_0 = arith.constant 0 : i32
    %c0_i32_1 = arith.constant 0 : i32
    %c0_i32_2 = arith.constant 0 : i32
    return %c0_i32, %c0_i32_0, %c0_i32_1 : i32, i32, i32
  }
  func.func @transform_9(%arg0: i32) -> (i32, i32, i32) {
    %c0_i32 = arith.constant 0 : i32
    %c0_i32_0 = arith.constant 0 : i32
    %c0_i32_1 = arith.constant 0 : i32
    %c0_i32_2 = arith.constant 0 : i32
    return %c0_i32, %c0_i32_0, %c0_i32_1 : i32, i32, i32
  }
  func.func @transform_10(%arg0: i32) -> (i32, i32) {
    %c0_i32 = arith.constant 0 : i32
    %c0_i32_0 = arith.constant 0 : i32
    %c0_i32_1 = arith.constant 0 : i32
    return %c0_i32, %c0_i32_0 : i32, i32
  }
  func.func @transform_11(%arg0: i32) -> (i32, i32) {
    %c0_i32 = arith.constant 0 : i32
    %c0_i32_0 = arith.constant 0 : i32
    %c0_i32_1 = arith.constant 0 : i32
    return %c0_i32, %c0_i32_0 : i32, i32
  }
  func.func @transform_12(%arg0: i32) -> (i32, i32) {
    %c0_i32 = arith.constant 0 : i32
    %c0_i32_0 = arith.constant 0 : i32
    %c0_i32_1 = arith.constant 0 : i32
    return %c0_i32, %c0_i32_0 : i32, i32
  }
}

</mosaic_0001>

<bundles_post_ra>
// kernel: tpu_custom_call.1
= control target key start
LH: loop header
LB: loop body
LE: loop exit
PB: predicated region body
PF: predicated region fallthrough
CT: control target
= control target key end

     0   :  { %vm51_vm0 = vcmask 261120   ;;  %s2187_s0 = inlined_call_operand.vmem [shape: f32[2,8,32], index: 0, kind: input, shape index: {}]   ;;  %s2188_s1 = inlined_call_operand.vmem [shape: f32[2,4,32], index: 1, kind: input, shape index: {}]   ;;  %s2189_s2 = inlined_call_operand.vmem [shape: bf16[2,32,96], index: 2, kind: input, shape index: {}]   ;;  %s2190_s3 = inlined_call_operand.vmem [shape: f32[2,1,96], index: 3, kind: input, shape index: {}]   ;;  %s2191_s4 = inlined_call_operand.vmem [shape: bf16[2,32,32], index: 4, kind: input, shape index: {}]   ;;  %s2192_s5 = inlined_call_operand.vmem [shape: f32[2,1,32], index: 5, kind: input, shape index: {}]   ;;  %s2193_s6 = inlined_call_operand.vmem [shape: bf16[2,32,128], index: 6, kind: input, shape index: {}]   ;;  %s2194_s7 = inlined_call_operand.vmem [shape: f32[2,1,128], index: 7, kind: input, shape index: {}]   ;;  %s2195_s8 = inlined_call_operand.vmem [shape: bf16[2,128,32], index: 8, kind: input, shape index: {}]   ;;  %s2196_s9 = inlined_call_operand.vmem [shape: f32[2,1,32], index: 9, kind: input, shape index: {}]   ;;  %s2197_s10 = inlined_call_operand.vmem [shape: f32[2,32], index: 10, kind: input, shape index: {}]   ;;  %s2198_s11 = inlined_call_operand.vmem [shape: bf16[32,128], index: 11, kind: input, shape index: {}]   ;;  %s2199_s12 = inlined_call_operand.hbm [shape: f32[16,128], index: 12, kind: output, shape index: {}]  }
   0x1   :  { %v1827_v0 = vld [vmem:[%s2187_s0] sm:$0xff] }
   0x2   :  { %v52_v1 = vsel %vm51_vm0, %v1827_v0, 0.0 }
   0x3   :  { %53 = vadd.xlane.f32.xlu0 %v52_v1 }
   0x4   :  { %17 = vsyncpa [#allocation3], 0  ;;  %v1834_v2 = vld [vmem:[%s2187_s0 + $0x8] sm:$0xff]  ;;  %v1750_v4 = vmov 32.0   ;;  %v1615_v23 = vld [vmem:[%s2189_s2] sm:$0xff]  ;;  %s1751_s14 = smov 96  }
   0x5   :  { %v55_v3 = vsel %vm51_vm0, %v1834_v2, 0.0  ;;  %1662 = vrcp.f32 %v1750_v4  ;;  %v1616_v21 = vld [vmem:[%s2189_s2 + $0x8] sm:$0xff]  ;;  %v1857_v40 = vld [vmem:[%s2188_s1] sm:$0xf]  ;;  %vm158_vm8 = vcmask 130048   ;;  %vm208_vm10 = vcmask 64512  }
   0x6   :  { %139 = vmatpush.bf16.msra.mxu0 %v1616_v21  ;;  %v103_v43 = vperm.slane %v1857_v40, 0  ;;  %v106_v48 = vperm.slane %v1857_v40, 1  ;;  %v1654_v53 = vld [vmem:[%s2190_s3] ss:$0 sm:$0xff]  ;;  %s1752_s15 = smov 64   ;;  %s1753_s16 = smov 80  }
   0x7   :  { %s1754_s17 = smov 112   ;;  %vm264_vm11 = vcmask 1043456   ;;  %s1755_s20 = smov 48  }
   0x8   :  { %s1757_s28 = smov 128   ;;  %s1758_s29 = smov 8  }
   0xa   :  { %140 = vmatpush.bf16.msra.mxu0 %v1615_v23 }
   0xb   :  { %56 = vadd.xlane.f32.xlu0 %v55_v3  ;;  %v1663_v5 = vpop.eup %1662 }
   0xc   :  { %v59_v6 = vmul.f32 32.0, %v1663_v5  ;;  %vm63_vm1 = vweird.f32 %v1663_v5 }
   0xe   :  { %v60_v7 = vsub.f32 1.0, %v59_v6  ;;  %v45_v6 = vlaneseq }
  0x10   :  { %v61_v8 = vmul.f32 %v1663_v5, %v60_v7  ;;  %v46_v7 = vshrl.u32 %v45_v6, 7 }
  0x12   :  { %v62_v9 = vadd.f32 %v1663_v5, %v61_v8  ;;  %v48_v8 = vand.u32 127, %v45_v6 }
  0x14   :  { %v1838_v10 = vsel %vm63_vm1, %v1663_v5, %v62_v9  ;;  %vm1877_vm9 = vcmp.le.s32.totalorder %v48_v8, %v46_v7  ;;  %v1617_v8 = vld [vmem:[%s2191_s4] sm:$0xff] }
  0x76   :  { %v54_v11 = vpop.xlane.xlu0 %53 }
  0x77   :  { %v65_v12 = vmul.f32 %v1838_v10, %v54_v11 }
  0x79   :  { %v67_v13 = vsub.f32 %v1827_v0, %v65_v12 }
  0x7b   :  { %v69_v14 = vmul.f32 %v67_v13, %v67_v13 }
  0x7d   :  { %v71_v15 = vsel %vm51_vm0, %v69_v14, 0.0 }
  0x7e   :  { %72 = vadd.xlane.f32.xlu1 %v71_v15  ;;  %v57_v16 = vpop.xlane.xlu0 %56 }
  0x7f   :  { %v66_v17 = vmul.f32 %v1838_v10, %v57_v16 }
  0x81   :  { %v68_v18 = vsub.f32 %v1834_v2, %v66_v17 }
  0x83   :  { %v70_v19 = vmul.f32 %v68_v18, %v68_v18 }
  0x85   :  { %v74_v20 = vsel %vm51_vm0, %v70_v19, 0.0 }
  0x86   :  { %75 = vadd.xlane.f32.xlu1 %v74_v20 }
  0xf1   :  { %v73_v22 = vpop.xlane.xlu1 %72 }
  0xf2   :  { %v77_v24 = vmul.f32 %v73_v22, %v1838_v10 }
  0xf4   :  { %v79_v25 = vadd.f32 1e-05, %v77_v24 }
  0xf6   :  { %1664 = vrsqrt.f32 %v79_v25  ;;  %vm87_vm3 = vweird.f32 %v79_v25 }
  0xf9   :  { %v76_v26 = vpop.xlane.xlu1 %75 }
  0xfa   :  { %v78_v27 = vmul.f32 %v76_v26, %v1838_v10 }
  0xfc   :  { %v1665_v28 = vpop.eup %1664  ;;  %v80_v29 = vadd.f32 1e-05, %v78_v27 }
  0xfd   :  { %v82_v30 = vmul.f32 %v1665_v28, %v79_v25  ;;  %vm88_vm2 = vweird.f32 %v1665_v28 }
  0xfe   :  { %1666 = vrsqrt.f32 %v80_v29  ;;  %vm89_vm4 = vmor %vm87_vm3, %vm88_vm2  ;;  %vm97_vm6 = vweird.f32 %v80_v29 }
  0xff   :  { %v83_v31 = vmul.f32 %v1665_v28, %v82_v30 }
 0x101   :  { %v84_v32 = vmul.f32 0.5, %v83_v31 }
 0x103   :  { %v85_v33 = vsub.f32 1.5, %v84_v32 }
 0x104   :  { %v1667_v34 = vpop.eup %1666 }
 0x105   :  { %v86_v35 = vmul.f32 %v1665_v28, %v85_v33  ;;  %v92_v36 = vmul.f32 %v1667_v34, %v80_v29  ;;  %vm98_vm5 = vweird.f32 %v1667_v34 }
 0x106   :  { %vm99_vm7 = vmor %vm97_vm6, %vm98_vm5 }
 0x107   :  { %v93_v37 = vmul.f32 %v1667_v34, %v92_v36  ;;  %v90_v38 = vsel %vm89_vm4, %v1665_v28, %v86_v35 }
 0x108   :  { %v101_v42 = vmul.f32 %v90_v38, %v67_v13 }
 0x109   :  { %v94_v39 = vmul.f32 0.5, %v93_v37 }
 0x10a   :  { %v104_v47 = vmul.f32 %v103_v43, %v101_v42 }
 0x10b   :  { %v95_v41 = vsub.f32 1.5, %v94_v39 }
 0x10c   :  { %v107_v50 = vadd.f32 %v106_v48, %v104_v47 }
 0x10d   :  { %v96_v44 = vmul.f32 %v1667_v34, %v95_v41 }
 0x10f   :  { %v100_v45 = vsel %vm99_vm7, %v1667_v34, %v96_v44 }
 0x110   :  { %v102_v46 = vmul.f32 %v100_v45, %v68_v18 }
 0x112   :  { %v105_v49 = vmul.f32 %v103_v43, %v102_v46 }
 0x114   :  { %v108_v51 = vadd.f32 %v106_v48, %v105_v49 }
 0x116   :  { %v109_v52 = vpack.c.bf16 %v108_v51, %v107_v50 }
 0x118   :  { %1445 = vmatmul.msk.bf16.vlgmr.msra.gmra.mxu0 %vm51_vm0, %v109_v52 }
 0x195   :  { %v142_v54 = vpop.f32.mrf.mxu0 }
 0x196   :  { %v143_v55 = vadd.f32 %v1654_v53, %v142_v54 }
 0x198   :  { %v151_v56 = vpack.c.bf16 %v143_v55, %v143_v55 }
 0x19a   :  { %v154_v57 = vunpack.c.l.b16 %v151_v56 }
 0x19c   :  { %v1865_v58 = vpack.c.b16 %v154_v57, %v154_v57 }
 0x19d   :  { %v144_v59 = vpop.f32.mrf.mxu0 }
 0x19e   :  { %v145_v60 = vadd.f32 %v1654_v53, %v144_v59  ;;  %156 = vrot.lane.b32.xlu2 %v1865_v58, %s1751_s14 }
 0x1a0   :  { %v152_v61 = vpack.c.bf16 %v145_v60, %v145_v60 }
 0x1a2   :  { %v179_v62 = vunpack.c.l.b16 %v152_v61 }
 0x1a4   :  { %v1869_v63 = vpack.c.b16 %v179_v62, %v179_v62 }
 0x1a6   :  { %181 = vrot.lane.b32.xlu2 %v1869_v63, %s1751_s14 }
 0x1f8   :  { %v157_v1 = vpop.permute.xlu2 %156 }
 0x1f9   :  { %v163_v3 = vsel %vm158_vm8, %v157_v1, 0 }
 0x1fa   :  { %172 = vmatpush.bf16.xpose.msra.mxu1 %v163_v3 }
 0x200   :  { %v182_v4 = vpop.permute.xlu2 %181 }
 0x201   :  { %1446 = vmatmul.msk.bf16.vlgmr.msra.gmra.mxu1 %vm158_vm8, %v151_v56  ;;  %v187_v5 = vsel %vm158_vm8, %v182_v4, 0 }
 0x202   :  { %196 = vmatpush.bf16.xpose.msra.mxu2 %v187_v5  ;;  %485 = vmatpush.bf16.msrb.mxu1 %v1617_v8 }
 0x209   :  { %1447 = vmatmul.msk.bf16.vlgmr.msra.gmra.mxu2 %vm158_vm8, %v152_v61 }
 0x27e   :  { %v174_v9 = vpop.f32.mrf.mxu1 }
 0x27f   :  { %v202_v12 = vmul.f32 0.25, %v174_v9 }
 0x281   :  { %v206_v13 = vsel %vm1877_vm9, %v202_v12, -1e+30 }
 0x282   :  { %v209_v14 = vsel %vm208_vm10, %v206_v13, -inf }
 0x283   :  { %210 = vmax.xlane.f32.xlu0 %v209_v14 }
 0x286   :  { %v176_v15 = vpop.f32.mrf.mxu1 }
 0x28c   :  { %v198_v16 = vpop.f32.mrf.mxu2 }
 0x28d   :  { %v203_v17 = vmul.f32 0.25, %v198_v16 }
 0x28f   :  { %v207_v18 = vsel %vm1877_vm9, %v203_v17, -1e+30 }
 0x290   :  { %v212_v19 = vsel %vm208_vm10, %v207_v18, -inf }
 0x291   :  { %213 = vmax.xlane.f32.xlu1 %v212_v19 }
 0x294   :  { %v200_v20 = vpop.f32.mrf.mxu2 }
 0x297   :  { %281 = vrot.lane.b32.xlu0 %v1869_v63, %s1752_s15 }
 0x2aa   :  { %259 = vrot.lane.b32.xlu1 %v1865_v58, %s1752_s15 }
 0x2b2   :  { %328 = vrot.lane.b32.xlu1 %v1869_v63, %s1753_s16 }
 0x2ba   :  { %326 = vrot.lane.b32.xlu1 %v1869_v63, %s1754_s17 }
 0x2f6   :  { %v211_v21 = vpop.xlane.xlu0 %210 }
 0x2f7   :  { %v215_v22 = vsub.f32 %v206_v13, %v211_v21 }
 0x2f9   :  { %v217_v23 = vmul.f32 1.442695, %v215_v22 }
 0x2fb   :  { %1668 = vpow2.f32 %v217_v23 }
 0x301   :  { %v1669_v24 = vpop.eup %1668 }
 0x302   :  { %v221_v25 = vsel %vm208_vm10, %v1669_v24, 0.0 }
 0x303   :  { %222 = vadd.xlane.f32.xlu2 %v221_v25 }
 0x304   :  { %v214_v26 = vpop.xlane.xlu1 %213 }
 0x305   :  { %v216_v27 = vsub.f32 %v207_v18, %v214_v26 }
 0x307   :  { %v219_v28 = vmul.f32 1.442695, %v216_v27 }
 0x309   :  { %1670 = vpow2.f32 %v219_v28  ;;  %v282_v31 = vpop.permute.xlu0 %281 }
 0x30a   :  { %v287_v34 = vsel %vm264_vm11, %v282_v31, 0 }
 0x30f   :  { %v1671_v29 = vpop.eup %1670 }
 0x310   :  { %v224_v30 = vsel %vm208_vm10, %v1671_v29, 0.0 }
 0x311   :  { %225 = vadd.xlane.f32.xlu0 %v224_v30 }
 0x31b   :  { %303 = vrot.lane.b32.xlu2 %v1865_v58, %s1754_s17 }
 0x31c   :  { %v260_v32 = vpop.permute.xlu1 %259 }
 0x31d   :  { %v266_v33 = vsel %vm264_vm11, %v260_v32, 0 }
 0x31e   :  { %275 = vmatpush.bf16.msra.mxu3 %v266_v33 }
 0x322   :  { %296 = vmatpush.bf16.msrb.mxu3 %v287_v34 }
 0x324   :  { %v329_v49 = vpop.permute.xlu1 %328 }
 0x325   :  { %305 = vrot.lane.b32.xlu0 %v1865_v58, %s1753_s16  ;;  %v334_v52 = vsel %vm158_vm8, %v329_v49, 0 }
 0x32c   :  { %v327_v7 = vpop.permute.xlu1 %326 }
 0x376   :  { %v223_v35 = vpop.xlane.xlu2 %222 }
 0x377   :  { %1672 = vrcp.f32 %v223_v35  ;;  %v238_v39 = vand.u32 2147483648, %v223_v35  ;;  %v236_v42 = vand.u32 2147483647, %v223_v35  ;;  %vm232_vm13 = vweird.f32 %v223_v35 }
 0x379   :  { %v239_v45 = vor.u32 1.1754944e-38, %v238_v39  ;;  %vm237_vm15 = vcmp.eq.f32.partialorder %v236_v42, 8.507059e+37 }
 0x37d   :  { %v1673_v36 = vpop.eup %1672 }
 0x37e   :  { %v228_v37 = vmul.f32 %v1673_v36, %v223_v35  ;;  %vm233_vm12 = vweird.f32 %v1673_v36  ;;  %v304_v6 = vpop.permute.xlu2 %303 }
 0x37f   :  { %vm234_vm14 = vmor %vm232_vm13, %vm233_vm12 }
 0x380   :  { %v229_v38 = vsub.f32 1.0, %v228_v37 }
 0x382   :  { %v230_v41 = vmul.f32 %v1673_v36, %v229_v38 }
 0x384   :  { %v226_v43 = vpop.xlane.xlu0 %225  ;;  %v231_v44 = vadd.f32 %v1673_v36, %v230_v41 }
 0x385   :  { %1674 = vrcp.f32 %v226_v43  ;;  %v253_v55 = vand.u32 2147483648, %v226_v43  ;;  %v251_v57 = vand.u32 2147483647, %v226_v43  ;;  %vm247_vm2 = vweird.f32 %v226_v43 }
 0x386   :  { %v235_v46 = vsel %vm234_vm14, %v1673_v36, %v231_v44 }
 0x387   :  { %v240_v47 = vsel %vm237_vm15, %v239_v45, %v235_v46  ;;  %v254_v60 = vor.u32 1.1754944e-38, %v253_v55  ;;  %vm252_vm4 = vcmp.eq.f32.partialorder %v251_v57, 8.507059e+37 }
 0x388   :  { %v241_v48 = vmul.f32 %v1669_v24, %v240_v47 }
 0x38a   :  { %v257_v50 = vpack.c.bf16 %v241_v48, %v241_v48 }
 0x38b   :  { %v1675_v51 = vpop.eup %1674 }
 0x38c   :  { %v243_v53 = vmul.f32 %v1675_v51, %v226_v43  ;;  %1448 = vmatmul.msk.bf16.vlgmr.msra.gmra.mxu3 %vm208_vm10, %v257_v50  ;;  %vm248_vm1 = vweird.f32 %v1675_v51 }
 0x38d   :  { %343 = vmatpush.bf16.xpose.msra.mxu3 %v334_v52  ;;  %vm249_vm3 = vmor %vm247_vm2, %vm248_vm1 }
 0x38e   :  { %v244_v54 = vsub.f32 1.0, %v243_v53 }
 0x390   :  { %v245_v56 = vmul.f32 %v1675_v51, %v244_v54 }
 0x392   :  { %v246_v59 = vadd.f32 %v1675_v51, %v245_v56 }
 0x394   :  { %v250_v61 = vsel %vm249_vm3, %v1675_v51, %v246_v59 }
 0x395   :  { %v255_v62 = vsel %vm252_vm4, %v254_v60, %v250_v61 }
 0x396   :  { %v256_v1 = vmul.f32 %v1671_v29, %v255_v62 }
 0x397   :  { %v306_v3 = vpop.permute.xlu0 %305 }
 0x398   :  { %v311_v4 = vsel %vm158_vm8, %v306_v3, 0  ;;  %v258_v5 = vpack.c.bf16 %v256_v1, %v256_v1 }
 0x399   :  { %320 = vmatpush.bf16.xpose.msrb.mxu0 %v311_v4 }
 0x39c   :  { %1449 = vmatmul.msk.bf16.vlgmr.msrb.gmra.mxu3 %vm208_vm10, %v258_v5  ;;  %v1618_v5 = vld [vmem:[%s2191_s4 + $0x8] sm:$0xff] }
 0x3a0   :  { %1450 = vmatmul.msk.bf16.vlgmr.msrb.gmra.mxu0 %vm158_vm8, %v304_v6 }
 0x3a1   :  { %462 = vmatpush.bf16.msra.mxu0 %v1618_v5  ;;  %v1627_v5 = vld [vmem:[%s2195_s8 + $0x30] sm:$0xff] }
 0x3ac   :  { %1451 = vmatmul.msk.bf16.vlgmr.msra.gmra.mxu3 %vm158_vm8, %v327_v7 }
 0x40f   :  { %v277_v9 = vpop.f32.mrf.mxu3 }
 0x417   :  { %v279_v12 = vpop.f32.mrf.mxu3 }
 0x41d   :  { %v322_v13 = vpop.f32.mrf.mxu0 }
 0x41e   :  { %v349_v14 = vmul.f32 0.25, %v322_v13 }
 0x41f   :  { %v298_v15 = vpop.f32.mrf.mxu3 }
 0x420   :  { %v302_v16 = vpack.c.bf16 %v298_v15, %v277_v9  ;;  %v351_v17 = vsel %vm1877_vm9, %v349_v14, -1e+30 }
 0x421   :  { %v353_v18 = vsel %vm208_vm10, %v351_v17, -inf }
 0x422   :  { %1463 = vmatmul.msk.bf16.vlgmr.msrb.gmra.mxu1 %vm158_vm8, %v302_v16  ;;  %354 = vmax.xlane.f32.xlu0 %v353_v18  ;;  %v1655_v16 = vld [vmem:[%s2192_s5] ss:$0 sm:$0xff] }
 0x425   :  { %v324_v19 = vpop.f32.mrf.mxu0 }
 0x427   :  { %v300_v20 = vpop.f32.mrf.mxu3 }
 0x42f   :  { %v345_v21 = vpop.f32.mrf.mxu3 }
 0x430   :  { %v350_v22 = vmul.f32 0.25, %v345_v21 }
 0x432   :  { %v352_v23 = vsel %vm1877_vm9, %v350_v22, -1e+30 }
 0x433   :  { %v356_v24 = vsel %vm208_vm10, %v352_v23, -inf }
 0x434   :  { %357 = vmax.xlane.f32.xlu1 %v356_v24 }
 0x437   :  { %v347_v25 = vpop.f32.mrf.mxu3 }
 0x44d   :  { %403 = vrot.lane.b32.xlu1 %v1865_v58, %s1755_s20 }
 0x495   :  { %v355_v26 = vpop.xlane.xlu0 %354 }
 0x496   :  { %v359_v27 = vsub.f32 %v351_v17, %v355_v26 }
 0x498   :  { %v361_v28 = vmul.f32 1.442695, %v359_v27 }
 0x49a   :  { %1676 = vpow2.f32 %v361_v28 }
 0x49f   :  { %v487_v13 = vpop.f32.mrf.mxu1 }
 0x4a0   :  { %v1677_v29 = vpop.eup %1676 }
 0x4a1   :  { %v365_v30 = vsel %vm208_vm10, %v1677_v29, 0.0 }
 0x4a2   :  { %366 = vadd.xlane.f32.xlu2 %v365_v30 }
 0x4a7   :  { %v358_v31 = vpop.xlane.xlu1 %357  ;;  %v489_v20 = vpop.f32.mrf.mxu1 }
 0x4a8   :  { %v360_v32 = vsub.f32 %v352_v23, %v358_v31 }
 0x4aa   :  { %v363_v33 = vmul.f32 1.442695, %v360_v32 }
 0x4ac   :  { %1678 = vpow2.f32 %v363_v33 }
 0x4b2   :  { %v1679_v34 = vpop.eup %1678 }
 0x4b3   :  { %v368_v35 = vsel %vm208_vm10, %v1679_v34, 0.0 }
 0x4b4   :  { %369 = vadd.xlane.f32.xlu0 %v368_v35 }
 0x4bf   :  { %v404_v36 = vpop.permute.xlu1 %403 }
 0x4c0   :  { %v409_v37 = vsel %vm264_vm11, %v404_v36, 0 }
 0x4c1   :  { %418 = vmatpush.bf16.msrb.mxu2 %v409_v37 }
 0x4c8   :  { %424 = vrot.lane.b32.xlu0 %v1869_v63, %s1755_s20 }
 0x515   :  { %v367_v58 = vpop.xlane.xlu2 %366 }
 0x516   :  { %1680 = vrcp.f32 %v367_v58  ;;  %v382_v42 = vand.u32 2147483648, %v367_v58  ;;  %v380_v44 = vand.u32 2147483647, %v367_v58  ;;  %vm376_vm6 = vweird.f32 %v367_v58 }
 0x518   :  { %v383_v46 = vor.u32 1.1754944e-38, %v382_v42  ;;  %vm381_vm12 = vcmp.eq.f32.partialorder %v380_v44, 8.507059e+37 }
 0x51c   :  { %v1681_v38 = vpop.eup %1680 }
 0x51d   :  { %v372_v39 = vmul.f32 %v1681_v38, %v367_v58  ;;  %vm377_vm5 = vweird.f32 %v1681_v38  ;;  %v1619_v58 = vld [vmem:[%s2193_s6] sm:$0xff] }
 0x51e   :  { %vm378_vm7 = vmor %vm376_vm6, %vm377_vm5 }
 0x51f   :  { %v373_v41 = vsub.f32 1.0, %v372_v39 }
 0x521   :  { %v374_v43 = vmul.f32 %v1681_v38, %v373_v41 }
 0x523   :  { %v375_v45 = vadd.f32 %v1681_v38, %v374_v43 }
 0x525   :  { %v379_v47 = vsel %vm378_vm7, %v1681_v38, %v375_v45 }
 0x526   :  { %v384_v48 = vsel %vm381_vm12, %v383_v46, %v379_v47 }
 0x527   :  { %v370_v49 = vpop.xlane.xlu0 %369  ;;  %v385_v50 = vmul.f32 %v1677_v29, %v384_v48 }
 0x528   :  { %1682 = vrcp.f32 %v370_v49  ;;  %v397_v54 = vand.u32 2147483648, %v370_v49  ;;  %v395_v56 = vand.u32 2147483647, %v370_v49  ;;  %vm391_vm14 = vweird.f32 %v370_v49 }
 0x529   :  { %v401_v63 = vpack.c.bf16 %v385_v50, %v385_v50 }
 0x52a   :  { %v398_v59 = vor.u32 1.1754944e-38, %v397_v54  ;;  %vm396_vm1 = vcmp.eq.f32.partialorder %v395_v56, 8.507059e+37 }
 0x52b   :  { %1452 = vmatmul.msk.bf16.vlgmr.msrb.gmra.mxu2 %vm208_vm10, %v401_v63 }
 0x52e   :  { %v1683_v51 = vpop.eup %1682 }
 0x52f   :  { %v387_v52 = vmul.f32 %v1683_v51, %v370_v49  ;;  %vm392_vm13 = vweird.f32 %v1683_v51 }
 0x530   :  { %vm393_vm15 = vmor %vm391_vm14, %vm392_vm13 }
 0x531   :  { %v388_v53 = vsub.f32 1.0, %v387_v52 }
 0x533   :  { %v389_v55 = vmul.f32 %v1683_v51, %v388_v53  ;;  %v544_v53 = vperm.slane %v1857_v40, 2 }
 0x535   :  { %v390_v57 = vadd.f32 %v1683_v51, %v389_v55 }
 0x537   :  { %v394_v60 = vsel %vm393_vm15, %v1683_v51, %v390_v57  ;;  %v547_v57 = vperm.slane %v1857_v40, 3  ;;  %v1626_v40 = vld [vmem:[%s2195_s8 + $0x28] sm:$0xff] }
 0x538   :  { %v399_v61 = vsel %vm396_vm1, %v398_v59, %v394_v60 }
 0x539   :  { %v400_v62 = vmul.f32 %v1679_v34, %v399_v61  ;;  %v1620_v34 = vld [vmem:[%s2193_s6 + $0x8] sm:$0xff] }
 0x53a   :  { %v425_v1 = vpop.permute.xlu0 %424  ;;  %580 = vmatpush.bf16.msra.mxu2 %v1620_v34 }
 0x53b   :  { %v430_v3 = vsel %vm264_vm11, %v425_v1, 0  ;;  %v402_v4 = vpack.c.bf16 %v400_v62, %v400_v62 }
 0x53c   :  { %439 = vmatpush.bf16.msrb.mxu3 %v430_v3 }
 0x53e   :  { %581 = vmatpush.bf16.msra.mxu2 %v1619_v58 }
 0x53f   :  { %1453 = vmatmul.msk.bf16.vlgmr.msrb.gmra.mxu3 %vm208_vm10, %v402_v4  ;;  %v1628_v4 = vld [vmem:[%s2195_s8 + $0x38] sm:$0xff] }
 0x540   :  { %671 = vmatpush.bf16.msra.mxu3 %v1628_v4 }
 0x544   :  { %672 = vmatpush.bf16.msra.mxu3 %v1627_v5 }
 0x548   :  { %673 = vmatpush.bf16.msra.mxu3 %v1626_v40 }
 0x5ae   :  { %v420_v6 = vpop.f32.mrf.mxu2 }
 0x5b6   :  { %v422_v7 = vpop.f32.mrf.mxu2 }
 0x5b7   :  { %v1624_v7 = vld [vmem:[%s2195_s8 + $0x18] sm:$0xff] }
 0x5c2   :  { %v441_v8 = vpop.f32.mrf.mxu3 }
 0x5c3   :  { %v445_v9 = vpack.c.bf16 %v441_v8, %v420_v6  ;;  %v1625_v6 = vld [vmem:[%s2195_s8 + $0x20] sm:$0xff]  ;;  %v1623_v8 = vld [vmem:[%s2195_s8 + $0x10] sm:$0xff] }
 0x5c4   :  { %674 = vmatpush.bf16.msra.mxu3 %v1625_v6 }
 0x5c5   :  { %1458 = vmatmul.msk.bf16.vlgmr.msra.gmra.mxu0 %vm158_vm8, %v445_v9  ;;  %v1622_v9 = vld [vmem:[%s2195_s8 + $0x8] sm:$0xff] }
 0x5c8   :  { %675 = vmatpush.bf16.msra.mxu3 %v1624_v7 }
 0x5ca   :  { %v443_v12 = vpop.f32.mrf.mxu3 }
 0x5cb   :  { %v1621_v12 = vld [vmem:[%s2195_s8] sm:$0xff] }
 0x5cc   :  { %676 = vmatpush.bf16.msra.mxu3 %v1623_v8 }
 0x5d0   :  { %677 = vmatpush.bf16.msra.mxu3 %v1622_v9  ;;  %v2020_v9 = vld [vmem:[%s2188_s1 + $0x4] sm:$0xf] }
 0x5d4   :  { %678 = vmatpush.bf16.msra.mxu3 %v1621_v12 }
 0x642   :  { %v464_v14 = vpop.f32.mrf.mxu0 }
 0x643   :  { %v488_v15 = vadd.f32 %v487_v13, %v464_v14  ;;  %v1656_v13 = vld [vmem:[%s2194_s7] ss:$0 sm:$0xff] }
 0x645   :  { %v492_v17 = vadd.f32 %v488_v15, %v1827_v0 }
 0x647   :  { %v1937_v18 = vadd.f32 %v1655_v16, %v492_v17 }
 0x649   :  { %v500_v19 = vsel %vm51_vm0, %v1937_v18, 0.0 }
 0x64a   :  { %501 = vadd.xlane.f32.xlu2 %v500_v19  ;;  %v466_v21 = vpop.f32.mrf.mxu0 }
 0x64b   :  { %v490_v22 = vadd.f32 %v489_v20, %v466_v21 }
 0x64d   :  { %v493_v23 = vadd.f32 %v490_v22, %v1834_v2 }
 0x64f   :  { %v1942_v24 = vadd.f32 %v1655_v16, %v493_v23 }
 0x651   :  { %v503_v25 = vsel %vm51_vm0, %v1942_v24, 0.0 }
 0x652   :  { %504 = vadd.xlane.f32.xlu0 %v503_v25 }
 0x6bd   :  { %v502_v26 = vpop.xlane.xlu2 %501 }
 0x6be   :  { %v506_v0 = vmul.f32 %v502_v26, %v1838_v10 }
 0x6c0   :  { %v508_v27 = vsub.f32 %v1937_v18, %v506_v0 }
 0x6c2   :  { %v510_v28 = vmul.f32 %v508_v27, %v508_v27 }
 0x6c4   :  { %v512_v29 = vsel %vm51_vm0, %v510_v28, 0.0 }
 0x6c5   :  { %513 = vadd.xlane.f32.xlu2 %v512_v29  ;;  %v505_v30 = vpop.xlane.xlu0 %504 }
 0x6c6   :  { %v507_v31 = vmul.f32 %v505_v30, %v1838_v10 }
 0x6c8   :  { %v509_v2 = vsub.f32 %v1942_v24, %v507_v31 }
 0x6ca   :  { %v511_v32 = vmul.f32 %v509_v2, %v509_v2 }
 0x6cc   :  { %v515_v33 = vsel %vm51_vm0, %v511_v32, 0.0 }
 0x6cd   :  { %516 = vadd.xlane.f32.xlu1 %v515_v33 }
 0x738   :  { %v514_v35 = vpop.xlane.xlu2 %513 }
 0x739   :  { %v518_v36 = vmul.f32 %v514_v35, %v1838_v10 }
 0x73b   :  { %v520_v37 = vadd.f32 1e-05, %v518_v36 }
 0x73d   :  { %1684 = vrsqrt.f32 %v520_v37  ;;  %vm528_vm3 = vweird.f32 %v520_v37 }
 0x740   :  { %v517_v38 = vpop.xlane.xlu1 %516 }
 0x741   :  { %v519_v39 = vmul.f32 %v517_v38, %v1838_v10 }
 0x743   :  { %v1685_v41 = vpop.eup %1684  ;;  %v521_v42 = vadd.f32 1e-05, %v519_v39 }
 0x744   :  { %v523_v43 = vmul.f32 %v1685_v41, %v520_v37  ;;  %vm529_vm2 = vweird.f32 %v1685_v41  ;;  %v1657_v37 = vld [vmem:[%s2196_s9] ss:$0 sm:$0xff] }
 0x745   :  { %1686 = vrsqrt.f32 %v521_v42  ;;  %vm530_vm4 = vmor %vm528_vm3, %vm529_vm2  ;;  %vm538_vm6 = vweird.f32 %v521_v42 }
 0x746   :  { %v524_v44 = vmul.f32 %v1685_v41, %v523_v43 }
 0x748   :  { %v525_v45 = vmul.f32 0.5, %v524_v44 }
 0x74a   :  { %v526_v46 = vsub.f32 1.5, %v525_v45 }
 0x74b   :  { %v1687_v47 = vpop.eup %1686 }
 0x74c   :  { %v527_v48 = vmul.f32 %v1685_v41, %v526_v46  ;;  %v533_v49 = vmul.f32 %v1687_v47, %v521_v42  ;;  %vm539_vm5 = vweird.f32 %v1687_v47 }
 0x74d   :  { %vm540_vm7 = vmor %vm538_vm6, %vm539_vm5 }
 0x74e   :  { %v534_v50 = vmul.f32 %v1687_v47, %v533_v49  ;;  %v531_v63 = vsel %vm530_vm4, %v1685_v41, %v527_v48 }
 0x74f   :  { %v542_v54 = vmul.f32 %v531_v63, %v508_v27 }
 0x750   :  { %v535_v51 = vmul.f32 0.5, %v534_v50 }
 0x751   :  { %v545_v59 = vmul.f32 %v544_v53, %v542_v54 }
 0x752   :  { %v536_v52 = vsub.f32 1.5, %v535_v51 }
 0x753   :  { %v548_v62 = vadd.f32 %v547_v57, %v545_v59 }
 0x754   :  { %v537_v55 = vmul.f32 %v1687_v47, %v536_v52 }
 0x756   :  { %v541_v56 = vsel %vm540_vm7, %v1687_v47, %v537_v55 }
 0x757   :  { %v543_v60 = vmul.f32 %v541_v56, %v509_v2 }
 0x759   :  { %v546_v61 = vmul.f32 %v544_v53, %v543_v60  ;;  %v1630_v53 = vld [vmem:[%s2189_s2 + $0x18] sm:$0xff] }
 0x75a   :  { %777 = vmatpush.bf16.msrb.mxu0 %v1630_v53 }
 0x75b   :  { %v549_v1 = vadd.f32 %v547_v57, %v546_v61  ;;  %v1629_v57 = vld [vmem:[%s2189_s2 + $0x10] sm:$0xff] }
 0x75d   :  { %v550_v3 = vpack.c.bf16 %v549_v1, %v548_v62 }
 0x75e   :  { %778 = vmatpush.bf16.msrb.mxu0 %v1629_v57 }
 0x75f   :  { %1472 = vmatmul.msk.bf16.vlgmr.msra.gmra.mxu2 %vm51_vm0, %v550_v3 }
 0x7e2   :  { %v583_v14 = vpop.f32.mrf.mxu2 }
 0x7e3   :  { %v584_v15 = vadd.f32 %v1656_v13, %v583_v14 }
 0x7e5   :  { %v590_v16 = vmul.f32 0.044715, %v584_v15  ;;  %v588_v2 = vmul.f32 0.5, %v584_v15 }
 0x7e7   :  { %v592_v17 = vmul.f32 %v590_v16, %v584_v15 }
 0x7e9   :  { %v594_v19 = vmul.f32 %v592_v17, %v584_v15 }
 0x7ea   :  { %v585_v20 = vpop.f32.mrf.mxu2 }
 0x7eb   :  { %v596_v21 = vadd.f32 %v594_v19, %v584_v15  ;;  %v586_v22 = vadd.f32 %v1656_v13, %v585_v20  ;;  %v739_v15 = vperm.slane %v2020_v9, 0  ;;  %v742_v20 = vperm.slane %v2020_v9, 1 }
 0x7ed   :  { %v591_v23 = vmul.f32 0.044715, %v586_v22  ;;  %v598_v25 = vmul.f32 0.7978846, %v596_v21  ;;  %v589_v32 = vmul.f32 0.5, %v586_v22 }
 0x7ef   :  { %v593_v26 = vmul.f32 %v591_v23, %v586_v22  ;;  %1688 = vtanh.f32 %v598_v25 }
 0x7f1   :  { %v595_v0 = vmul.f32 %v593_v26, %v586_v22 }
 0x7f3   :  { %v597_v27 = vadd.f32 %v595_v0, %v586_v22 }
 0x7f5   :  { %v599_v28 = vmul.f32 0.7978846, %v597_v27  ;;  %v1689_v29 = vpop.eup %1688  ;;  %v1658_v27 = vld [vmem:[%s2190_s3 + $0x1] ss:$0 sm:$0xff] }
 0x7f6   :  { %v602_v30 = vadd.f32 1.0, %v1689_v29 }
 0x7f7   :  { %1690 = vtanh.f32 %v599_v28 }
 0x7f8   :  { %v604_v34 = vmul.f32 %v602_v30, %v588_v2 }
 0x7fd   :  { %v1691_v31 = vpop.eup %1690 }
 0x7fe   :  { %v603_v33 = vadd.f32 1.0, %v1691_v31 }
 0x800   :  { %v605_v35 = vmul.f32 %v603_v33, %v589_v32 }
 0x802   :  { %v606_v36 = vpack.c.bf16 %v605_v35, %v604_v34 }
 0x804   :  { %679 = vmatmul.bf16.vlgmr.msra.gmra.mxu3 %v606_v36 }
 0x887   :  { %v680_v58 = vpop.f32.mrf.mxu3 }
 0x888   :  { %v685_v38 = vadd.f32 %v680_v58, %v1937_v18 }
 0x88a   :  { %v1994_v39 = vadd.f32 %v1657_v37, %v685_v38 }
 0x88c   :  { %v695_v41 = vsel %vm51_vm0, %v1994_v39, 0.0 }
 0x88d   :  { %696 = vadd.xlane.f32.xlu2 %v695_v41 }
 0x88f   :  { %v682_v42 = vpop.f32.mrf.mxu3 }
 0x890   :  { %v686_v43 = vadd.f32 %v682_v42, %v1942_v24 }
 0x892   :  { %v1999_v44 = vadd.f32 %v1657_v37, %v686_v43 }
 0x894   :  { %v698_v45 = vsel %vm51_vm0, %v1999_v44, 0.0 }
 0x895   :  { %699 = vadd.xlane.f32.xlu2 %v698_v45 }
 0x900   :  { %v697_v46 = vpop.xlane.xlu2 %696 }
 0x901   :  { %v701_v47 = vmul.f32 %v697_v46, %v1838_v10 }
 0x903   :  { %v703_v18 = vsub.f32 %v1994_v39, %v701_v47 }
 0x905   :  { %v705_v48 = vmul.f32 %v703_v18, %v703_v18 }
 0x907   :  { %v707_v49 = vsel %vm51_vm0, %v705_v48, 0.0 }
 0x908   :  { %708 = vadd.xlane.f32.xlu2 %v707_v49  ;;  %v700_v50 = vpop.xlane.xlu2 %699 }
 0x909   :  { %v702_v63 = vmul.f32 %v700_v50, %v1838_v10 }
 0x90b   :  { %v704_v24 = vsub.f32 %v1999_v44, %v702_v63 }
 0x90d   :  { %v706_v51 = vmul.f32 %v704_v24, %v704_v24 }
 0x90f   :  { %v710_v52 = vsel %vm51_vm0, %v706_v51, 0.0 }
 0x910   :  { %711 = vadd.xlane.f32.xlu2 %v710_v52 }
 0x97b   :  { %v709_v54 = vpop.xlane.xlu2 %708 }
 0x97c   :  { %v713_v55 = vmul.f32 %v709_v54, %v1838_v10 }
 0x97e   :  { %v715_v56 = vadd.f32 1e-05, %v713_v55 }
 0x980   :  { %1692 = vrsqrt.f32 %v715_v56  ;;  %vm723_vm13 = vweird.f32 %v715_v56 }
 0x983   :  { %v712_v59 = vpop.xlane.xlu2 %711 }
 0x984   :  { %v714_v60 = vmul.f32 %v712_v59, %v1838_v10 }
 0x986   :  { %v1693_v61 = vpop.eup %1692  ;;  %v716_v62 = vadd.f32 1e-05, %v714_v60 }
 0x987   :  { %v718_v1 = vmul.f32 %v1693_v61, %v715_v56  ;;  %vm724_vm12 = vweird.f32 %v1693_v61 }
 0x988   :  { %1694 = vrsqrt.f32 %v716_v62  ;;  %vm725_vm14 = vmor %vm723_vm13, %vm724_vm12  ;;  %vm733_vm1 = vweird.f32 %v716_v62 }
 0x989   :  { %v719_v3 = vmul.f32 %v1693_v61, %v718_v1 }
 0x98b   :  { %v720_v4 = vmul.f32 0.5, %v719_v3 }
 0x98d   :  { %v721_v5 = vsub.f32 1.5, %v720_v4 }
 0x98e   :  { %v1695_v40 = vpop.eup %1694 }
 0x98f   :  { %v722_v6 = vmul.f32 %v1693_v61, %v721_v5  ;;  %v728_v7 = vmul.f32 %v1695_v40, %v716_v62  ;;  %vm734_vm15 = vweird.f32 %v1695_v40 }
 0x990   :  { %vm735_vm2 = vmor %vm733_vm1, %vm734_vm15 }
 0x991   :  { %v729_v8 = vmul.f32 %v1695_v40, %v728_v7  ;;  %v726_v12 = vsel %vm725_vm14, %v1693_v61, %v722_v6 }
 0x992   :  { %v737_v16 = vmul.f32 %v726_v12, %v703_v18 }
 0x993   :  { %v730_v13 = vmul.f32 0.5, %v729_v8 }
 0x994   :  { %v740_v21 = vmul.f32 %v739_v15, %v737_v16 }
 0x995   :  { %v731_v14 = vsub.f32 1.5, %v730_v13 }
 0x996   :  { %v743_v25 = vadd.f32 %v742_v20, %v740_v21 }
 0x997   :  { %v732_v17 = vmul.f32 %v1695_v40, %v731_v14 }
 0x999   :  { %v736_v19 = vsel %vm735_vm2, %v1695_v40, %v732_v17 }
 0x99a   :  { %v738_v22 = vmul.f32 %v736_v19, %v704_v24 }
 0x99c   :  { %v741_v23 = vmul.f32 %v739_v15, %v738_v22 }
 0x99e   :  { %v744_v26 = vadd.f32 %v742_v20, %v741_v23 }
 0x9a0   :  { %v745_v0 = vpack.c.bf16 %v744_v26, %v743_v25 }
 0x9a2   :  { %1519 = vmatmul.msk.bf16.vlgmr.msrb.gmra.mxu0 %vm51_vm0, %v745_v0 }
 0xa1f   :  { %v780_v28 = vpop.f32.mrf.mxu0 }
 0xa20   :  { %v781_v29 = vadd.f32 %v1658_v27, %v780_v28 }
 0xa22   :  { %v790_v30 = vpack.c.bf16 %v781_v29, %v781_v29 }
 0xa24   :  { %v793_v31 = vunpack.c.l.b16 %v790_v30 }
 0xa26   :  { %v2028_v2 = vpack.c.b16 %v793_v31, %v793_v31 }
 0xa27   :  { %v782_v32 = vpop.f32.mrf.mxu0 }
 0xa28   :  { %v783_v33 = vadd.f32 %v1658_v27, %v782_v32  ;;  %939 = vrot.lane.b32.xlu1 %v2028_v2, %s1753_s16  ;;  %795 = vrot.lane.b32.xlu0 %v2028_v2, %s1751_s14 }
 0xa2a   :  { %v791_v34 = vpack.c.bf16 %v783_v33, %v783_v33 }
 0xa2c   :  { %v817_v35 = vunpack.c.l.b16 %v791_v34 }
 0xa2e   :  { %v2034_v36 = vpack.c.b16 %v817_v35, %v817_v35 }
 0xa30   :  { %819 = vrot.lane.b32.xlu2 %v2034_v36, %s1751_s14  ;;  %960 = vrot.lane.b32.xlu1 %v2034_v36, %s1754_s17 }
 0xa31   :  { %962 = vrot.lane.b32.xlu0 %v2034_v36, %s1753_s16 }
 0xa38   :  { %937 = vrot.lane.b32.xlu2 %v2028_v2, %s1754_s17 }
 0xa8a   :  { %v820_v37 = vpop.permute.xlu2 %819 }
 0xa8b   :  { %v825_v58 = vsel %vm158_vm8, %v820_v37, 0 }
 0xa8c   :  { %834 = vmatpush.bf16.xpose.msrb.mxu2 %v825_v58 }
 0xa92   :  { %v938_v45 = vpop.permute.xlu2 %937 }
 0xa93   :  { %1525 = vmatmul.msk.bf16.vlgmr.msrb.gmra.mxu2 %vm158_vm8, %v791_v34 }
 0xa9a   :  { %v940_v38 = vpop.permute.xlu1 %939  ;;  %v796_v41 = vpop.permute.xlu0 %795 }
 0xa9b   :  { %v945_v42 = vsel %vm158_vm8, %v940_v38, 0  ;;  %v801_v43 = vsel %vm158_vm8, %v796_v41, 0 }
 0xa9c   :  { %810 = vmatpush.bf16.xpose.msra.mxu1 %v801_v43  ;;  %954 = vmatpush.bf16.xpose.msra.mxu2 %v945_v42 }
 0xaa2   :  { %v961_v18 = vpop.permute.xlu1 %960 }
 0xaa3   :  { %v963_v46 = vpop.permute.xlu0 %962  ;;  %1524 = vmatmul.msk.bf16.vlgmr.msra.gmra.mxu1 %vm158_vm8, %v790_v30  ;;  %1528 = vmatmul.msk.bf16.vlgmr.msra.gmra.mxu2 %vm158_vm8, %v938_v45 }
 0xaa4   :  { %v968_v47 = vsel %vm158_vm8, %v963_v46, 0 }
 0xaa5   :  { %977 = vmatpush.bf16.xpose.msrb.mxu3 %v968_v47 }
 0xaac   :  { %1529 = vmatmul.msk.bf16.vlgmr.msrb.gmra.mxu3 %vm158_vm8, %v961_v18 }
 0xb16   :  { %v836_v48 = vpop.f32.mrf.mxu2 }
 0xb17   :  { %v841_v49 = vmul.f32 0.25, %v836_v48 }
 0xb19   :  { %v843_v50 = vsel %vm1877_vm9, %v841_v49, -1e+30 }
 0xb1a   :  { %v847_v63 = vsel %vm208_vm10, %v843_v50, -inf }
 0xb1b   :  { %848 = vmax.xlane.f32.xlu2 %v847_v63 }
 0xb1e   :  { %v838_v24 = vpop.f32.mrf.mxu2 }
 0xb20   :  { %v812_v51 = vpop.f32.mrf.mxu1 }
 0xb21   :  { %v840_v52 = vmul.f32 0.25, %v812_v51 }
 0xb23   :  { %v842_v53 = vsel %vm1877_vm9, %v840_v52, -1e+30 }
 0xb24   :  { %v844_v54 = vsel %vm208_vm10, %v842_v53, -inf }
 0xb25   :  { %845 = vmax.xlane.f32.xlu0 %v844_v54 }
 0xb26   :  { %v956_v55 = vpop.f32.mrf.mxu2 }
 0xb27   :  { %v983_v56 = vmul.f32 0.25, %v956_v55 }
 0xb28   :  { %v814_v57 = vpop.f32.mrf.mxu1 }
 0xb29   :  { %v985_v59 = vsel %vm1877_vm9, %v983_v56, -1e+30 }
 0xb2a   :  { %v987_v60 = vsel %vm208_vm10, %v985_v59, -inf }
 0xb2b   :  { %988 = vmax.xlane.f32.xlu1 %v987_v60 }
 0xb2e   :  { %v958_v61 = vpop.f32.mrf.mxu2 }
 0xb2f   :  { %v979_v62 = vpop.f32.mrf.mxu3 }
 0xb30   :  { %v984_v1 = vmul.f32 0.25, %v979_v62 }
 0xb32   :  { %v986_v3 = vsel %vm1877_vm9, %v984_v1, -1e+30 }
 0xb33   :  { %v990_v4 = vsel %vm208_vm10, %v986_v3, -inf }
 0xb34   :  { %991 = vmax.xlane.f32.xlu0 %v990_v4 }
 0xb37   :  { %v981_v5 = vpop.f32.mrf.mxu3 }
 0xb48   :  { %915 = vrot.lane.b32.xlu0 %v2034_v36, %s1752_s15 }
 0xb8e   :  { %v849_v40 = vpop.xlane.xlu2 %848 }
 0xb8f   :  { %v851_v6 = vsub.f32 %v843_v50, %v849_v40 }
 0xb91   :  { %v854_v7 = vmul.f32 1.442695, %v851_v6 }
 0xb93   :  { %1696 = vpow2.f32 %v854_v7 }
 0xb98   :  { %v846_v8 = vpop.xlane.xlu0 %845 }
 0xb99   :  { %v1697_v12 = vpop.eup %1696  ;;  %v850_v13 = vsub.f32 %v842_v53, %v846_v8 }
 0xb9a   :  { %v859_v14 = vsel %vm208_vm10, %v1697_v12, 0.0 }
 0xb9b   :  { %v852_v15 = vmul.f32 1.442695, %v850_v13  ;;  %860 = vadd.xlane.f32.xlu1 %v859_v14 }
 0xb9d   :  { %1698 = vpow2.f32 %v852_v15 }
 0xb9e   :  { %v989_v11 = vpop.xlane.xlu1 %988 }
 0xb9f   :  { %v993_v16 = vsub.f32 %v985_v59, %v989_v11 }
 0xba1   :  { %v995_v17 = vmul.f32 1.442695, %v993_v16 }
 0xba3   :  { %v2067_v19 = vpop.eup %1698  ;;  %1700 = vpow2.f32 %v995_v17 }
 0xba4   :  { %v856_v20 = vsel %vm208_vm10, %v2067_v19, 0.0 }
 0xba5   :  { %857 = vadd.xlane.f32.xlu2 %v856_v20 }
 0xba7   :  { %v992_v21 = vpop.xlane.xlu0 %991 }
 0xba8   :  { %v994_v22 = vsub.f32 %v986_v3, %v992_v21 }
 0xba9   :  { %v2071_v23 = vpop.eup %1700 }
 0xbaa   :  { %v997_v25 = vmul.f32 1.442695, %v994_v22  ;;  %v999_v26 = vsel %vm208_vm10, %v2071_v23, 0.0 }
 0xbab   :  { %1000 = vadd.xlane.f32.xlu0 %v999_v26 }
 0xbac   :  { %1702 = vpow2.f32 %v997_v25 }
 0xbb2   :  { %v2075_v0 = vpop.eup %1702 }
 0xbb3   :  { %v1002_v27 = vsel %vm208_vm10, %v2075_v0, 0.0 }
 0xbb4   :  { %1003 = vadd.xlane.f32.xlu2 %v1002_v27  ;;  %894 = vrot.lane.b32.xlu1 %v2028_v2, %s1752_s15 }
 0xbba   :  { %v916_v28 = vpop.permute.xlu0 %915 }
 0xbbb   :  { %v921_v29 = vsel %vm264_vm11, %v916_v28, 0 }
 0xbbc   :  { %930 = vmatpush.bf16.msrb.mxu1 %v921_v29 }
 0xbbf   :  { %1058 = vrot.lane.b32.xlu0 %v2034_v36, %s1755_s20 }
 0xbcc   :  { %1037 = vrot.lane.b32.xlu2 %v2028_v2, %s1755_s20 }
 0xc0e   :  { %v861_v30 = vpop.xlane.xlu1 %860 }
 0xc0f   :  { %1704 = vrcp.f32 %v861_v30  ;;  %v888_v35 = vand.u32 2147483648, %v861_v30  ;;  %v886_v58 = vand.u32 2147483647, %v861_v30  ;;  %vm882_vm3 = vweird.f32 %v861_v30 }
 0xc11   :  { %v889_v41 = vor.u32 1.1754944e-38, %v888_v35  ;;  %vm887_vm5 = vcmp.eq.f32.partialorder %v886_v58, 8.507059e+37 }
 0xc15   :  { %v1705_v31 = vpop.eup %1704 }
 0xc16   :  { %v878_v32 = vmul.f32 %v1705_v31, %v861_v30  ;;  %vm883_vm9 = vweird.f32 %v1705_v31  ;;  %v1631_v30 = vld [vmem:[%s2191_s4 + $0x10] sm:$0xff] }
 0xc17   :  { %vm884_vm4 = vmor %vm882_vm3, %vm883_vm9  ;;  %1119 = vmatpush.bf16.msra.mxu3 %v1631_v30 }
 0xc18   :  { %v879_v33 = vsub.f32 1.0, %v878_v32  ;;  %v858_v34 = vpop.xlane.xlu2 %857 }
 0xc19   :  { %1706 = vrcp.f32 %v858_v34  ;;  %v873_v48 = vand.u32 2147483648, %v858_v34  ;;  %v871_v50 = vand.u32 2147483647, %v858_v34  ;;  %vm867_vm7 = vweird.f32 %v858_v34 }
 0xc1a   :  { %v880_v37 = vmul.f32 %v1705_v31, %v879_v33 }
 0xc1b   :  { %v874_v53 = vor.u32 1.1754944e-38, %v873_v48  ;;  %vm872_vm13 = vcmp.eq.f32.partialorder %v871_v50, 8.507059e+37 }
 0xc1c   :  { %v881_v38 = vadd.f32 %v1705_v31, %v880_v37 }
 0xc1e   :  { %v885_v42 = vsel %vm884_vm4, %v1705_v31, %v881_v38  ;;  %v1001_v36 = vpop.xlane.xlu0 %1000  ;;  %v1632_v31 = vld [vmem:[%s2191_s4 + $0x18] sm:$0xff] }
 0xc1f   :  { %v1707_v43 = vpop.eup %1706  ;;  %v890_v2 = vsel %vm887_vm5, %v889_v41, %v885_v42  ;;  %1708 = vrcp.f32 %v1001_v36  ;;  %v1016_v4 = vand.u32 2147483648, %v1001_v36  ;;  %vm1010_vm15 = vweird.f32 %v1001_v36  ;;  %1096 = vmatpush.bf16.msrb.mxu2 %v1632_v31 }
 0xc20   :  { %v891_v45 = vmul.f32 %v1697_v12, %v890_v2  ;;  %v863_v46 = vmul.f32 %v1707_v43, %v858_v34  ;;  %vm868_vm6 = vweird.f32 %v1707_v43  ;;  %v1014_v6 = vand.u32 2147483647, %v1001_v36  ;;  %v1659_v2 = vld [vmem:[%s2192_s5 + $0x1] ss:$0 sm:$0xff] }
 0xc21   :  { %vm869_vm12 = vmor %vm867_vm7, %vm868_vm6  ;;  %v1017_v11 = vor.u32 1.1754944e-38, %v1016_v4 }
 0xc22   :  { %v864_v47 = vsub.f32 1.0, %v863_v46  ;;  %v893_v18 = vpack.c.bf16 %v891_v45, %v891_v45  ;;  %vm1015_vm9 = vcmp.eq.f32.partialorder %v1014_v6, 8.507059e+37 }
 0xc24   :  { %v865_v49 = vmul.f32 %v1707_v43, %v864_v47  ;;  %1527 = vmatmul.msk.bf16.vlgmr.msrb.gmra.mxu1 %vm208_vm10, %v893_v18 }
 0xc25   :  { %v1709_v63 = vpop.eup %1708 }
 0xc26   :  { %v866_v24 = vadd.f32 %v1707_v43, %v865_v49  ;;  %v1006_v51 = vmul.f32 %v1709_v63, %v1001_v36  ;;  %v895_v52 = vpop.permute.xlu1 %894  ;;  %vm1011_vm14 = vweird.f32 %v1709_v63 }
 0xc27   :  { %v900_v54 = vsel %vm264_vm11, %v895_v52, 0  ;;  %v1004_v55 = vpop.xlane.xlu2 %1003  ;;  %vm1012_vm1 = vmor %vm1010_vm15, %vm1011_vm14 }
 0xc28   :  { %v870_v56 = vsel %vm869_vm12, %v1707_v43, %v866_v24  ;;  %v1007_v57 = vsub.f32 1.0, %v1006_v51  ;;  %1710 = vrcp.f32 %v1004_v55  ;;  %909 = vmatpush.bf16.msra.mxu0 %v900_v54  ;;  %v1031_v14 = vand.u32 2147483648, %v1004_v55 }
 0xc29   :  { %v875_v59 = vsel %vm872_vm13, %v874_v53, %v870_v56  ;;  %v1029_v17 = vand.u32 2147483647, %v1004_v55  ;;  %vm1025_vm3 = vweird.f32 %v1004_v55 }
 0xc2a   :  { %v876_v60 = vmul.f32 %v2067_v19, %v875_v59  ;;  %v1008_v61 = vmul.f32 %v1709_v63, %v1007_v57  ;;  %v1032_v21 = vor.u32 1.1754944e-38, %v1031_v14 }
 0xc2b   :  { %vm1030_vm5 = vcmp.eq.f32.partialorder %v1029_v17, 8.507059e+37 }
 0xc2c   :  { %v892_v62 = vpack.c.bf16 %v876_v60, %v876_v60  ;;  %v1009_v3 = vadd.f32 %v1709_v63, %v1008_v61  ;;  %v1634_v61 = vld [vmem:[%s2193_s6 + $0x18] sm:$0xff] }
 0xc2e   :  { %v1711_v1 = vpop.eup %1710  ;;  %1526 = vmatmul.msk.bf16.vlgmr.msra.gmra.mxu0 %vm208_vm10, %v892_v62  ;;  %v1013_v13 = vsel %vm1012_vm1, %v1709_v63, %v1009_v3  ;;  %v1633_v3 = vld [vmem:[%s2193_s6 + $0x10] sm:$0xff]  ;;  %s1425_s6 = sshll.u32 %s2199_s12, 4  ;;  %s1426_s6 = int_to_ptr.hbm [resolvable:$true] %s1425_s6 }
 0xc2f   :  { %v1021_v5 = vmul.f32 %v1711_v1, %v1004_v55  ;;  %v1038_v40 = vpop.permute.xlu2 %1037  ;;  %vm1026_vm2 = vweird.f32 %v1711_v1  ;;  %v1018_v19 = vsel %vm1015_vm9, %v1017_v11, %v1013_v13 }
 0xc30   :  { %v1043_v7 = vsel %vm264_vm11, %v1038_v40, 0  ;;  %vm1027_vm4 = vmor %vm1025_vm3, %vm1026_vm2  ;;  %v1019_v25 = vmul.f32 %v2071_v23, %v1018_v19 }
 0xc31   :  { %v1022_v8 = vsub.f32 1.0, %v1021_v5  ;;  %1052 = vmatpush.bf16.msrb.mxu0 %v1043_v7  ;;  %v1059_v12 = vpop.permute.xlu0 %1058 }
 0xc32   :  { %v1064_v15 = vsel %vm264_vm11, %v1059_v12, 0  ;;  %v1035_v29 = vpack.c.bf16 %v1019_v25, %v1019_v25 }
 0xc33   :  { %v1023_v16 = vmul.f32 %v1711_v1, %v1022_v8  ;;  %1073 = vmatpush.bf16.msra.mxu1 %v1064_v15 }
 0xc35   :  { %v1024_v20 = vadd.f32 %v1711_v1, %v1023_v16  ;;  %1217 = vmatpush.bf16.msra.mxu0 %v1634_v61 }
 0xc37   :  { %v1028_v22 = vsel %vm1027_vm4, %v1711_v1, %v1024_v20 }
 0xc38   :  { %v1033_v26 = vsel %vm1030_vm5, %v1032_v21, %v1028_v22  ;;  %v1179_v21 = vperm.slane %v2020_v9, 2 }
 0xc39   :  { %v1034_v27 = vmul.f32 %v2075_v0, %v1033_v26  ;;  %1218 = vmatpush.bf16.msra.mxu0 %v1633_v3 }
 0xc3b   :  { %v1036_v28 = vpack.c.bf16 %v1034_v27, %v1034_v27  ;;  %v1182_v27 = vperm.slane %v2020_v9, 3  ;;  %v1640_v9 = vld [vmem:[%s2195_s8 + $0x68] sm:$0xff] }
 0xc3d   :  { %1531 = vmatmul.msk.bf16.vlgmr.msra.gmra.mxu1 %vm208_vm10, %v1036_v28 }
 0xc3e   :  { %1530 = vmatmul.msk.bf16.vlgmr.msrb.gmra.mxu0 %vm208_vm10, %v1035_v29 }
 0xca1   :  { %v932_v23 = vpop.f32.mrf.mxu1 }
 0xca9   :  { %v934_v32 = vpop.f32.mrf.mxu1 }
 0xcab   :  { %v911_v33 = vpop.f32.mrf.mxu0 }
 0xcac   :  { %v936_v0 = vpack.c.bf16 %v932_v23, %v911_v33  ;;  %v1642_v33 = vld [vmem:[%s2195_s8 + $0x78] sm:$0xff] }
 0xcad   :  { %1309 = vmatpush.bf16.msrb.mxu1 %v1642_v33 }
 0xcae   :  { %1541 = vmatmul.msk.bf16.vlgmr.msra.gmra.mxu3 %vm158_vm8, %v936_v0  ;;  %v1641_v0 = vld [vmem:[%s2195_s8 + $0x70] sm:$0xff] }
 0xcb1   :  { %1310 = vmatpush.bf16.msrb.mxu1 %v1641_v0 }
 0xcb3   :  { %v913_v34 = vpop.f32.mrf.mxu0 }
 0xcb4   :  { %v1639_v34 = vld [vmem:[%s2195_s8 + $0x60] sm:$0xff] }
 0xcb5   :  { %1311 = vmatpush.bf16.msrb.mxu1 %v1640_v9 }
 0xcb9   :  { %1312 = vmatpush.bf16.msrb.mxu1 %v1639_v34 }
 0xcba   :  { %v1075_v35 = vpop.f32.mrf.mxu1 }
 0xcbb   :  { %v1054_v37 = vpop.f32.mrf.mxu0 }
 0xcbc   :  { %v1079_v58 = vpack.c.bf16 %v1075_v35, %v1054_v37  ;;  %v1638_v35 = vld [vmem:[%s2195_s8 + $0x58] sm:$0xff]  ;;  %v1637_v37 = vld [vmem:[%s2195_s8 + $0x50] sm:$0xff] }
 0xcbd   :  { %1313 = vmatpush.bf16.msrb.mxu1 %v1638_v35 }
 0xcbe   :  { %1536 = vmatmul.msk.bf16.vlgmr.msrb.gmra.mxu2 %vm158_vm8, %v1079_v58  ;;  %v1636_v58 = vld [vmem:[%s2195_s8 + $0x48] sm:$0xff] }
 0xcc1   :  { %1314 = vmatpush.bf16.msrb.mxu1 %v1637_v37  ;;  %v1332_v37 = vld [vmem:[%s2197_s10] sm:$0x3]  ;;  %s1756_s10 = smov [#allocation2]  }
 0xcc2   :  { %v1077_v38 = vpop.f32.mrf.mxu1  ;;  %s1423_s20 = sshll.u32 %s1756_s10, 4  ;;  %s1424_s20 = int_to_ptr.vmem [resolvable:$true] %s1423_s20 }
 0xcc3   :  { %v1056_v41 = vpop.f32.mrf.mxu0  ;;  %v1660_v38 = vld [vmem:[%s2194_s7 + $0x1] ss:$0 sm:$0xff] }
 0xcc4   :  { %v1635_v41 = vld [vmem:[%s2195_s8 + $0x40] sm:$0xff] }
 0xcc5   :  { %1315 = vmatpush.bf16.msrb.mxu1 %v1636_v58 }
 0xcc9   :  { %1316 = vmatpush.bf16.msrb.mxu1 %v1635_v41  ;;  %v1377_v41 = vperm.slane %v1332_v37, 0 }
 0xd31   :  { %v1121_v42 = vpop.f32.mrf.mxu3 }
 0xd39   :  { %v1123_v18 = vpop.f32.mrf.mxu3 }
 0xd41   :  { %v1098_v36 = vpop.f32.mrf.mxu2 }
 0xd42   :  { %v1122_v43 = vadd.f32 %v1121_v42, %v1098_v36 }
 0xd44   :  { %v1126_v45 = vadd.f32 %v1122_v43, %v1994_v39 }
 0xd46   :  { %v2108_v46 = vadd.f32 %v1659_v2, %v1126_v45 }
 0xd48   :  { %v1135_v47 = vsel %vm51_vm0, %v2108_v46, 0.0 }
 0xd49   :  { %1136 = vadd.xlane.f32.xlu1 %v1135_v47  ;;  %v1100_v48 = vpop.f32.mrf.mxu2 }
 0xd4a   :  { %v1124_v49 = vadd.f32 %v1123_v18, %v1100_v48 }
 0xd4c   :  { %v1127_v50 = vadd.f32 %v1124_v49, %v1999_v44 }
 0xd4e   :  { %v2113_v63 = vadd.f32 %v1659_v2, %v1127_v50 }
 0xd50   :  { %v1138_v24 = vsel %vm51_vm0, %v2113_v63, 0.0 }
 0xd51   :  { %1139 = vadd.xlane.f32.xlu2 %v1138_v24 }
 0xdbc   :  { %v1137_v51 = vpop.xlane.xlu1 %1136 }
 0xdbd   :  { %v1141_v39 = vmul.f32 %v1137_v51, %v1838_v10 }
 0xdbf   :  { %v1143_v52 = vsub.f32 %v2108_v46, %v1141_v39 }
 0xdc1   :  { %v1145_v53 = vmul.f32 %v1143_v52, %v1143_v52 }
 0xdc3   :  { %v1147_v54 = vsel %vm51_vm0, %v1145_v53, 0.0 }
 0xdc4   :  { %1148 = vadd.xlane.f32.xlu0 %v1147_v54  ;;  %v1140_v55 = vpop.xlane.xlu2 %1139 }
 0xdc5   :  { %v1142_v56 = vmul.f32 %v1140_v55, %v1838_v10 }
 0xdc7   :  { %v1144_v44 = vsub.f32 %v2113_v63, %v1142_v56 }
 0xdc9   :  { %v1146_v57 = vmul.f32 %v1144_v44, %v1144_v44 }
 0xdcb   :  { %v1150_v59 = vsel %vm51_vm0, %v1146_v57, 0.0 }
 0xdcc   :  { %1151 = vadd.xlane.f32.xlu1 %v1150_v59 }
 0xe37   :  { %v1149_v60 = vpop.xlane.xlu0 %1148 }
 0xe38   :  { %v1153_v62 = vmul.f32 %v1149_v60, %v1838_v10 }
 0xe3a   :  { %v1155_v1 = vadd.f32 1e-05, %v1153_v62  ;;  %v1661_v62 = vld [vmem:[%s2196_s9 + $0x1] ss:$0 sm:$0xff] }
 0xe3c   :  { %1712 = vrsqrt.f32 %v1155_v1  ;;  %vm1163_vm10 = vweird.f32 %v1155_v1 }
 0xe3f   :  { %v1152_v4 = vpop.xlane.xlu1 %1151 }
 0xe40   :  { %v1154_v5 = vmul.f32 %v1152_v4, %v1838_v10 }
 0xe42   :  { %v1713_v40 = vpop.eup %1712  ;;  %v1156_v6 = vadd.f32 1e-05, %v1154_v5 }
 0xe43   :  { %v1158_v7 = vmul.f32 %v1713_v40, %v1155_v1  ;;  %vm1164_vm8 = vweird.f32 %v1713_v40 }
 0xe44   :  { %1714 = vrsqrt.f32 %v1156_v6  ;;  %vm1165_vm11 = vmor %vm1163_vm10, %vm1164_vm8  ;;  %vm1173_vm7 = vweird.f32 %v1156_v6 }
 0xe45   :  { %v1159_v8 = vmul.f32 %v1713_v40, %v1158_v7 }
 0xe47   :  { %v1160_v12 = vmul.f32 0.5, %v1159_v8 }
 0xe49   :  { %v1161_v13 = vsub.f32 1.5, %v1160_v12 }
 0xe4a   :  { %v1715_v14 = vpop.eup %1714 }
 0xe4b   :  { %v1162_v15 = vmul.f32 %v1713_v40, %v1161_v13  ;;  %v1168_v11 = vmul.f32 %v1715_v14, %v1156_v6  ;;  %vm1174_vm6 = vweird.f32 %v1715_v14 }
 0xe4c   :  { %vm1175_vm12 = vmor %vm1173_vm7, %vm1174_vm6 }
 0xe4d   :  { %v1169_v16 = vmul.f32 %v1715_v14, %v1168_v11  ;;  %v1166_v17 = vsel %vm1165_vm11, %v1713_v40, %v1162_v15 }
 0xe4e   :  { %v1177_v22 = vmul.f32 %v1166_v17, %v1143_v52 }
 0xe4f   :  { %v1170_v19 = vmul.f32 0.5, %v1169_v16 }
 0xe50   :  { %v1180_v28 = vmul.f32 %v1179_v21, %v1177_v22 }
 0xe51   :  { %v1171_v20 = vsub.f32 1.5, %v1170_v19 }
 0xe52   :  { %v1183_v31 = vadd.f32 %v1182_v27, %v1180_v28 }
 0xe53   :  { %v1172_v25 = vmul.f32 %v1715_v14, %v1171_v20 }
 0xe55   :  { %v1176_v26 = vsel %vm1175_vm12, %v1715_v14, %v1172_v25 }
 0xe56   :  { %v1178_v29 = vmul.f32 %v1176_v26, %v1144_v44  ;;  %v1643_v26 = vld [vmem:[%s2198_s11] sm:$0xff] }
 0xe58   :  { %v1181_v30 = vmul.f32 %v1179_v21, %v1178_v29  ;;  %v1644_v21 = vld [vmem:[%s2198_s11 + $0x8] sm:$0xff] }
 0xe59   :  { %1409 = vmatpush.bf16.msra.mxu2 %v1644_v21 }
 0xe5a   :  { %v1184_v23 = vadd.f32 %v1182_v27, %v1181_v30 }
 0xe5c   :  { %v1185_v32 = vpack.c.bf16 %v1184_v23, %v1183_v31 }
 0xe5d   :  { %1410 = vmatpush.bf16.msra.mxu2 %v1643_v26 }
 0xe5e   :  { %1556 = vmatmul.msk.bf16.vlgmr.msra.gmra.mxu0 %vm51_vm0, %v1185_v32 }
 0xedb   :  { %v1220_v42 = vpop.f32.mrf.mxu0 }
 0xedc   :  { %v1221_v36 = vadd.f32 %v1660_v38, %v1220_v42 }
 0xede   :  { %v1227_v43 = vmul.f32 0.044715, %v1221_v36  ;;  %v1225_v56 = vmul.f32 0.5, %v1221_v36 }
 0xee0   :  { %v1229_v2 = vmul.f32 %v1227_v43, %v1221_v36 }
 0xee2   :  { %v1231_v45 = vmul.f32 %v1229_v2, %v1221_v36  ;;  %v1380_v2 = vperm.slane %v1332_v37, 1 }
 0xee3   :  { %v1222_v47 = vpop.f32.mrf.mxu0 }
 0xee4   :  { %v1233_v18 = vadd.f32 %v1231_v45, %v1221_v36  ;;  %v1223_v48 = vadd.f32 %v1660_v38, %v1222_v47 }
 0xee6   :  { %v1228_v49 = vmul.f32 0.044715, %v1223_v48  ;;  %v1235_v50 = vmul.f32 0.7978846, %v1233_v18  ;;  %v1226_v44 = vmul.f32 0.5, %v1223_v48 }
 0xee8   :  { %v1230_v24 = vmul.f32 %v1228_v49, %v1223_v48  ;;  %1716 = vtanh.f32 %v1235_v50 }
 0xeea   :  { %v1232_v51 = vmul.f32 %v1230_v24, %v1223_v48 }
 0xeec   :  { %v1234_v39 = vadd.f32 %v1232_v51, %v1223_v48 }
 0xeee   :  { %v1236_v52 = vmul.f32 0.7978846, %v1234_v39  ;;  %v1717_v53 = vpop.eup %1716 }
 0xeef   :  { %v1239_v54 = vadd.f32 1.0, %v1717_v53 }
 0xef0   :  { %1718 = vtanh.f32 %v1236_v52 }
 0xef1   :  { %v1241_v59 = vmul.f32 %v1239_v54, %v1225_v56 }
 0xef6   :  { %v1719_v55 = vpop.eup %1718 }
 0xef7   :  { %v1240_v57 = vadd.f32 1.0, %v1719_v55 }
 0xef9   :  { %v1242_v60 = vmul.f32 %v1240_v57, %v1226_v44 }
 0xefb   :  { %v1243_v61 = vpack.c.bf16 %v1242_v60, %v1241_v59 }
 0xefd   :  { %1317 = vmatmul.bf16.vlgmr.msrb.gmra.mxu1 %v1243_v61 }
 0xf7a   :  { %v1318_v1 = vpop.f32.mrf.mxu1 }
 0xf7b   :  { %v1323_v3 = vadd.f32 %v1318_v1, %v2108_v46 }
 0xf7d   :  { %v1330_v4 = vadd.f32 %v1661_v62, %v1323_v3 }
 0xf7f   :  { %v1333_v5 = vsel %vm51_vm0, %v1330_v4, 0.0 }
 0xf80   :  { %1334 = vadd.xlane.f32.xlu2 %v1333_v5 }
 0xf82   :  { %v1320_v40 = vpop.f32.mrf.mxu1 }
 0xf83   :  { %v1324_v6 = vadd.f32 %v1320_v40, %v2113_v63 }
 0xf85   :  { %v1331_v7 = vadd.f32 %v1661_v62, %v1324_v6 }
 0xf87   :  { %v1336_v8 = vsel %vm51_vm0, %v1331_v7, 0.0 }
 0xf88   :  { %1337 = vadd.xlane.f32.xlu0 %v1336_v8 }
 0xff3   :  { %v1335_v12 = vpop.xlane.xlu2 %1334 }
 0xff4   :  { %v1339_v13 = vmul.f32 %v1335_v12, %v1838_v10 }
 0xff6   :  { %v1341_v14 = vsub.f32 %v1330_v4, %v1339_v13 }
 0xff8   :  { %v1343_v15 = vmul.f32 %v1341_v14, %v1341_v14 }
 0xffa   :  { %v1345_v11 = vsel %vm51_vm0, %v1343_v15, 0.0 }
 0xffb   :  { %1346 = vadd.xlane.f32.xlu1 %v1345_v11  ;;  %v1338_v46 = vpop.xlane.xlu0 %1337 }
 0xffc   :  { %v1340_v16 = vmul.f32 %v1338_v46, %v1838_v10 }
 0xffe   :  { %v1342_v17 = vsub.f32 %v1331_v7, %v1340_v16 }
0x1000   :  { %v1344_v19 = vmul.f32 %v1342_v17, %v1342_v17 }
0x1002   :  { %v1348_v20 = vsel %vm51_vm0, %v1344_v19, 0.0 }
0x1003   :  { %1349 = vadd.xlane.f32.xlu2 %v1348_v20 }
0x106e   :  { %v1347_v63 = vpop.xlane.xlu1 %1346 }
0x106f   :  { %v1351_v22 = vmul.f32 %v1347_v63, %v1838_v10 }
0x1071   :  { %v1353_v25 = vadd.f32 1e-05, %v1351_v22 }
0x1073   :  { %1720 = vrsqrt.f32 %v1353_v25  ;;  %vm1361_vm14 = vweird.f32 %v1353_v25 }
0x1076   :  { %v1350_v27 = vpop.xlane.xlu2 %1349 }
0x1077   :  { %v1352_v28 = vmul.f32 %v1350_v27, %v1838_v10 }
0x1079   :  { %v1721_v29 = vpop.eup %1720  ;;  %v1354_v30 = vadd.f32 1e-05, %v1352_v28 }
0x107a   :  { %v1356_v31 = vmul.f32 %v1721_v29, %v1353_v25  ;;  %vm1362_vm13 = vweird.f32 %v1721_v29 }
0x107b   :  { %1722 = vrsqrt.f32 %v1354_v30  ;;  %vm1363_vm15 = vmor %vm1361_vm14, %vm1362_vm13  ;;  %vm1371_vm2 = vweird.f32 %v1354_v30 }
0x107c   :  { %v1357_v23 = vmul.f32 %v1721_v29, %v1356_v31 }
0x107e   :  { %v1358_v32 = vmul.f32 0.5, %v1357_v23 }
0x1080   :  { %v1359_v33 = vsub.f32 1.5, %v1358_v32 }
0x1081   :  { %v1723_v0 = vpop.eup %1722 }
0x1082   :  { %v1360_v9 = vmul.f32 %v1721_v29, %v1359_v33  ;;  %v1366_v34 = vmul.f32 %v1723_v0, %v1354_v30  ;;  %vm1372_vm1 = vweird.f32 %v1723_v0 }
0x1083   :  { %vm1373_vm9 = vmor %vm1371_vm2, %vm1372_vm1 }
0x1084   :  { %v1367_v35 = vmul.f32 %v1723_v0, %v1366_v34  ;;  %v1364_v58 = vsel %vm1363_vm15, %v1721_v29, %v1360_v9 }
0x1085   :  { %v1375_v42 = vmul.f32 %v1364_v58, %v1341_v14 }
0x1086   :  { %v1368_v10 = vmul.f32 0.5, %v1367_v35 }
0x1087   :  { %v1378_v45 = vmul.f32 %v1377_v41, %v1375_v42 }
0x1088   :  { %v1369_v38 = vsub.f32 1.5, %v1368_v10 }
0x1089   :  { %v1381_v48 = vadd.f32 %v1380_v2, %v1378_v45 }
0x108a   :  { %v1370_v36 = vmul.f32 %v1723_v0, %v1369_v38 }
0x108c   :  { %v1374_v43 = vsel %vm1373_vm9, %v1723_v0, %v1370_v36 }
0x108d   :  { %v1376_v47 = vmul.f32 %v1374_v43, %v1342_v17 }
0x108f   :  { %v1379_v18 = vmul.f32 %v1377_v41, %v1376_v47 }
0x1091   :  { %v1382_v49 = vadd.f32 %v1380_v2, %v1379_v18 }
0x1093   :  { %v1383_v50 = vpack.c.bf16 %v1382_v49, %v1381_v48 }
0x1095   :  { %1614 = vmatmul.msk.bf16.vlgmr.msra.gmra.mxu2 %vm51_vm0, %v1383_v50 }
0x1118   :  { %v1412_v24 = vpop.f32.mrf.mxu2 }
0x1119   :  { %1417 = vst [vmem:[#allocation2] sm:$0xff] %v1412_v24 }
0x1120   :  { %v1414_v51 = vpop.f32.mrf.mxu2 }
0x1121   :  { %1418 = vst [vmem:[#allocation2 + $0x8] sm:$0xff] %v1414_v51 }
0x1122   :  { %1431 = dma.vmem_to_hbm [thread:$0]  %s1424_s20, 256, %s1426_s6, [#allocation3], %s1757_s28, %s1757_s28, %s1758_s29  }
0x1123   :  { %1748 = dma.done.wait [#allocation3], 256  }
0x1124   :  { %1749 = vsyncadd [#allocation3], 4294967040 }
0x1125   :  { %1436 = vsyncpa [#allocation3], 1 }

</bundles_post_ra>
